<compile_context>
chip_gen: v5e
topology: v5e:2x2
jax: 0.10.0
libtpu: 0.0.40
codegen_flags: <defaults>
</compile_context>

<pallas_src>
import functools

import jax
import jax.numpy as jnp
from jax import lax
from jax.experimental import pallas as pl
from jax.experimental.pallas import tpu as pltpu

_EIG_FLOOR = 1e-30  # absolute guard for log/rsqrt; TODO(synk): a relative floor
                    # (eps * max eigenvalue) would be slightly more robust.

_VMEM = pltpu.MemorySpace.VMEM
_SMEM = pltpu.MemorySpace.SMEM


# ----------------------- in-kernel index/mask helpers -----------------------
# Built from 2-D broadcasted_iota + float floor (no vector integer div/mod,
# no concatenate, no lane-compacting reshapes) — pure VALU work, ~16 vregs.


def _within_block_pos(shape, axis, n):
    # Returns (i // n, i % n) along `axis` as exact small floats.
    idx = lax.broadcasted_iota(jnp.int32, shape, axis).astype(jnp.float32)
    blk = jnp.floor((idx + 0.5) * (1.0 / n))          # == i // n, robustly
    return blk, idx - blk * n                          # == i % n


def _col_tiler(n, bn):
    # T[j, c] = 1 where c % n == j   (A @ T repeats A's n columns across bn lanes)
    _, pos = _within_block_pos((n, bn), 1, n)
    j = lax.broadcasted_iota(jnp.int32, (n, bn), 0).astype(jnp.float32)
    return jnp.where(pos == j, 1.0, 0.0)


def _row_tiler(n, bn):
    # T[r, i] = 1 where r % n == i   (T @ A repeats A's n rows across bn sublanes)
    _, pos = _within_block_pos((bn, n), 0, n)
    i = lax.broadcasted_iota(jnp.int32, (bn, n), 1).astype(jnp.float32)
    return jnp.where(pos == i, 1.0, 0.0)


def _blockdiag_mask(n, bn):
    rb, _ = _within_block_pos((bn, bn), 0, n)
    cb, _ = _within_block_pos((bn, bn), 1, n)
    return rb == cb


# ------------------------------ Pallas kernels ------------------------------
# All kernels run as a single grid step: the whole batch is a few KiB, so
# launch/DMA latency dominates — fuse, pack lane-dense, don't tile.


def _whiten_congruence_kernel(q_ref, lam_ref, xc_ref, o_ref):
    # Inputs : q (N,N), lam (1,N) = eigh(g);  xc (N, B*N) column-stacked batch.
    # Output : o (N, B*N) column-stacked  W x_b W,  W = g^{-1/2} = Q lam^{-1/2} Q^T.
    n = q_ref.shape[0]
    bn = xc_ref.shape[1]
    q = q_ref[...]
    lam = jnp.maximum(lam_ref[...], _EIG_FLOOR)
    w = lax.dot_general(q * lax.rsqrt(lam), q, (((1,), (1,)), ((), ())),
                        preferred_element_type=jnp.float32)            # (N, N)
    u = jnp.dot(w, xc_ref[...], preferred_element_type=jnp.float32)    # W x_b, col-stacked

    # kron(I_B, W): repeat W across lanes/sublanes with tiny selector matmuls,
    # zero off-diagonal blocks with an iota mask.
    w_rep = jnp.dot(_row_tiler(n, bn),
                    jnp.dot(w, _col_tiler(n, bn),
                            preferred_element_type=jnp.float32),
                    preferred_element_type=jnp.float32)                 # (B*N, B*N)
    m = jnp.where(_blockdiag_mask(n, bn), w_rep, 0.0)

    # (W x_b) W for the whole batch as ONE K=B*N matmul; lane-dense store.
    o_ref[...] = jnp.dot(u, m, preferred_element_type=jnp.float32)      # (N, B*N)


def _log_tangent_mean_kernel(qs_ref, lam_ref, o_ref):
    # Tangent-space mean (1/B) sum_b Q_b diag(log lam_b) Q_b^T as one lane-dense
    # (N, B*N) @ (B*N, N) MXU matmul (batch packed into the contraction lanes).
    qs = qs_ref[...]                                     # (N, B*N)
    lam = jnp.maximum(lam_ref[...], _EIG_FLOOR)          # (1, B*N)
    n = qs.shape[0]
    b = qs.shape[1] // n
    acc = lax.dot_general(qs * jnp.log(lam), qs, (((1,), (1,)), ((), ())),
                          preferred_element_type=jnp.float32)           # (N, N)
    o_ref[...] = acc * (1.0 / b)


def _normalize_kernel(scale_ref, qc_ref, qtr_ref, lam_ref, o_ref, *, eps):
    # Fused dispersion + normalization from eigh of the whitened batch:
    #   qc  (N, B*N)  column-stacked eigenvectors Q_b
    #   qtr (B*N, N)  row-stacked     Q_b^T
    #   lam (1, B*N)  eigenvalues
    #   var = mean_b ||log lam_b||^2 ;  p = scale / (sqrt(var) + eps)
    #   o_b = Q_b diag(lam_b^p) Q_b^T   (column-stacked, lane-dense)
    n = qc_ref.shape[0]
    bn = qc_ref.shape[1]
    b = bn // n
    log_lam = jnp.log(jnp.maximum(lam_ref[...], _EIG_FLOOR))            # (1, B*N)
    var = jnp.sum(log_lam * log_lam, axis=-1, keepdims=True) * (1.0 / b)
    p = scale_ref[0] / (jnp.sqrt(var) + eps)                            # (1, 1)
    f = jnp.exp(p * log_lam)                                            # lam ** p
    g = qc_ref[...] * f                                                 # Q_b diag(f_b), col-stacked

    # blockdiag(Q_b^T): tile the N columns of row-stacked Q_b^T across B*N
    # lanes (one K=N selector matmul), zero off-diagonal blocks.
    qt_rep = jnp.dot(qtr_ref[...], _col_tiler(n, bn),
                     preferred_element_type=jnp.float32)                # (B*N, B*N)
    h = jnp.where(_blockdiag_mask(n, bn), qt_rep, 0.0)

    o_ref[...] = jnp.dot(g, h, preferred_element_type=jnp.float32)       # (N, B*N)


# ----------------------------- host-side packing -----------------------------
# Free XLA layout plumbing so every batched kernel operand/result is a
# lane-dense (16, 128) slab.


def _col_stack(a):
    b, n, _ = a.shape
    return jnp.transpose(a, (1, 0, 2)).reshape(n, b * n).astype(jnp.float32)


def _col_unstack(a, b):
    n = a.shape[0]
    return jnp.transpose(a.reshape(n, b, n), (1, 0, 2))


# --------------------------------- wrappers ----------------------------------


def whiten_congruence(q, lam, x):
    # y_b = W x_b W with W = Q diag(lam^-1/2) Q^T (W built in-kernel, never in HBM).
    B, n, _ = x.shape
    out = pl.pallas_call(
        _whiten_congruence_kernel,
        out_shape=jax.ShapeDtypeStruct((n, B * n), jnp.float32),
        in_specs=[pl.BlockSpec(memory_space=_VMEM)] * 3,
        out_specs=pl.BlockSpec(memory_space=_VMEM),
    )(q.astype(jnp.float32), lam.reshape(1, n).astype(jnp.float32), _col_stack(x))
    return _col_unstack(out, B)


def log_tangent_mean(q, lam):
    # (1/B) sum_b Q_b diag(log lam_b) Q_b^T.
    B, n, _ = q.shape
    return pl.pallas_call(
        _log_tangent_mean_kernel,
        out_shape=jax.ShapeDtypeStruct((n, n), jnp.float32),
        in_specs=[pl.BlockSpec(memory_space=_VMEM)] * 2,
        out_specs=pl.BlockSpec(memory_space=_VMEM),
    )(_col_stack(q), lam.reshape(1, B * n).astype(jnp.float32))


def rbn_normalize(q, lam, scale, eps):
    # Fused: var / std from the whitened eigenvalues + sym_mat_pow(., scale/(std+eps)).
    B, n, _ = q.shape
    qc = _col_stack(q)
    qtr = jnp.transpose(q, (0, 2, 1)).reshape(B * n, n).astype(jnp.float32)
    lam_row = lam.reshape(1, B * n).astype(jnp.float32)
    scale_arr = jnp.asarray(scale, jnp.float32).reshape(1)
    out = pl.pallas_call(
        functools.partial(_normalize_kernel, eps=float(eps)),
        out_shape=jax.ShapeDtypeStruct((n, B * n), jnp.float32),
        in_specs=[pl.BlockSpec(memory_space=_SMEM),
                  pl.BlockSpec(memory_space=_VMEM),
                  pl.BlockSpec(memory_space=_VMEM),
                  pl.BlockSpec(memory_space=_VMEM)],
        out_specs=pl.BlockSpec(memory_space=_VMEM),
    )(scale_arr, qc, qtr, lam_row)
    return _col_unstack(out, B)


def _spd_eigh(mats):
    # TODO(synk): symmetric eigendecomposition has no clean Pallas TPU
    # equivalent; computed with jnp.linalg.eigh (XLA).  All O(B*N^3) matmul
    # work that consumes it runs inside the Pallas kernels above.
    return jnp.linalg.eigh(mats)


# --------------------------- RiemannianBatchNorm fwd -------------------------


def riemannian_batch_norm_forward(x, scale, karcher_flow_steps=1, eps=1e-5):
    """Training-mode forward pass of RiemannianBatchNorm (metric='airm')."""
    x = x.astype(jnp.float32)

    # ---- Karcher flow (Frechet mean), initialized at the arithmetic mean ----
    # Arithmetic mean of 8 KiB: plain XLA (a pallas_call here is pure dispatch).
    g = jnp.mean(x, axis=0)
    for _ in range(karcher_flow_steps):
        lam_g, q_g = _spd_eigh(g)                    # single (N, N) matrix
        s = whiten_congruence(q_g, lam_g, x)         # g^-1/2 x_b g^-1/2 (fused W)
        lam_s, q_s = _spd_eigh(s)
        t = log_tangent_mean(q_s, lam_s)             # mean of log-maps at g
        # Exp-map back: g <- g^1/2 expm(t) g^1/2.  Single 16x16 matrices: plain
        # jnp (XLA fuses) — a pallas_call here is pure launch overhead.
        lam_t, q_t = _spd_eigh(t)
        exp_t = (q_t * jnp.exp(lam_t)) @ q_t.T
        g_sqrt = (q_g * jnp.sqrt(jnp.maximum(lam_g, _EIG_FLOOR))) @ q_g.T
        g = g_sqrt @ exp_t @ g_sqrt
    mean = g

    # ---- parallel transport to identity + fused dispersion / normalization ----
    lam_m, q_m = _spd_eigh(mean)
    xw = whiten_congruence(q_m, lam_m, x)            # mean^-1/2 x_b mean^-1/2
    lam_c, q_c = _spd_eigh(xw)

    # TODO(synk): running_mean / running_var geodesic EMA buffer updates are
    # training-time side effects that do not affect the forward output; omitted.

    # var = mean_b ||logm(xw_b)||_F^2 ; out = sym_mat_pow(xw, scale/(sqrt(var)+eps))
    return rbn_normalize(q_c, lam_c, scale, eps)


# ----------------------------- pure-JAX reference -----------------------------


def _reference_forward(x, scale, karcher_flow_steps=1, eps=1e-5):
    def sym_fn(a, fn):
        w, v = jnp.linalg.eigh(a)
        return jnp.einsum('...ik,...k,...jk->...ij', v, fn(w), v)

    def sym_pow(a, p):
        return sym_fn(a, lambda w: jnp.maximum(w, _EIG_FLOOR) ** p)

    x = x.astype(jnp.float32)
    g = jnp.mean(x, axis=0)
    for _ in range(karcher_flow_steps):
        w_inv = sym_pow(g, -0.5)
        s = w_inv @ x @ w_inv
        t = jnp.mean(sym_fn(s, lambda w: jnp.log(jnp.maximum(w, _EIG_FLOOR))), axis=0)
        g_sqrt = sym_pow(g, 0.5)
        g = g_sqrt @ sym_fn(t, jnp.exp) @ g_sqrt
    w_inv = sym_pow(g, -0.5)
    xw = w_inv @ x @ w_inv
    ev, _ = jnp.linalg.eigh(xw)
    var = jnp.mean(jnp.sum(jnp.log(jnp.maximum(ev, _EIG_FLOOR)) ** 2, axis=-1))
    p = jnp.asarray(scale, jnp.float32).reshape(()) / (jnp.sqrt(var) + eps)
    return sym_pow(xw, p)


# ------------------------------------ main ------------------------------------

if __name__ == "__main__":
    key = jax.random.PRNGKey(0)
    B, N = 8, 16                                     # batch of 16x16 SPD mats (B*N = 128 lanes)

    a = jax.random.normal(key, (B, N, N), dtype=jnp.float32)
    x = a @ jnp.swapaxes(a, -1, -2) + N * jnp.eye(N, dtype=jnp.float32)   # SPD

    # Deterministic parameter init, exactly as in the module's __init__.
    scale = jnp.ones((1,), dtype=jnp.float32)        # nn.Parameter(torch.ones(1))

    fwd = jax.jit(functools.partial(riemannian_batch_norm_forward,
                                    karcher_flow_steps=1, eps=1e-5))
    out = jax.block_until_ready(fwd(x, scale))

    ref_fn = jax.jit(functools.partial(_reference_forward,
                                       karcher_flow_steps=1, eps=1e-5))
    ref = jax.block_until_ready(ref_fn(x, scale))

    assert out.shape == x.shape
    assert bool(jnp.all(jnp.isfinite(out)))
    assert bool(jnp.allclose(out, ref, rtol=2e-3, atol=2e-3)), \
        float(jnp.max(jnp.abs(out - ref)))
    print("KERNEL_OK")
</pallas_src>

<mosaic_0001>
module attributes {stable_mosaic.version = 11 : i64} {
  func.func @_whiten_congruence_kernel(%arg0: memref<16x16xf32, #tpu.memory_space<vmem>>, %arg1: memref<1x16xf32, #tpu.memory_space<vmem>>, %arg2: memref<16x128xf32, #tpu.memory_space<vmem>>, %arg3: memref<16x128xf32, #tpu.memory_space<vmem>>) attributes {dimension_semantics = [], scalar_prefetch = 0 : i64, scratch_operands = 0 : i64, tpu.core_type = #tpu.core_type<tc>} {
    %c0 = arith.constant 0 : index
    %c0_0 = arith.constant 0 : index
    %0 = vector.load %arg0[%c0, %c0_0] : memref<16x16xf32, #tpu.memory_space<vmem>>, vector<16x16xf32>
    %c0_1 = arith.constant 0 : index
    %c0_2 = arith.constant 0 : index
    %1 = vector.load %arg1[%c0_1, %c0_2] : memref<1x16xf32, #tpu.memory_space<vmem>>, vector<1x16xf32>
    %cst = arith.constant 1.000000e-30 : f32
    %2 = vector.broadcast %cst : f32 to vector<1x16xf32>
    %3 = arith.maximumf %1, %2 : vector<1x16xf32>
    %4 = math.rsqrt %3 : vector<1x16xf32>
    %5 = vector.broadcast %4 : vector<1x16xf32> to vector<16x16xf32>
    %6 = arith.mulf %0, %5 : vector<16x16xf32>
    %cst_3 = arith.constant dense<0.000000e+00> : vector<16x16xf32>
    %7 = tpu.matmul %6, %0, %cst_3 {dimension_numbers = #tpu.dot_dimension_numbers<[1], [1], [0], [0], [0, 0, 1, 0], [], []>} : vector<16x16xf32>, vector<16x16xf32>, vector<16x16xf32> -> vector<16x16xf32>
    %c0_4 = arith.constant 0 : index
    %c0_5 = arith.constant 0 : index
    %8 = vector.load %arg2[%c0_4, %c0_5] : memref<16x128xf32, #tpu.memory_space<vmem>>, vector<16x128xf32>
    %cst_6 = arith.constant dense<0.000000e+00> : vector<16x128xf32>
    %9 = tpu.matmul %7, %8, %cst_6 {dimension_numbers = #tpu.dot_dimension_numbers<[1], [0], [0], [1], [0, 0, 1, 1], [], []>} : vector<16x16xf32>, vector<16x128xf32>, vector<16x128xf32> -> vector<16x128xf32>
    %10 = tpu.iota {dimensions = array<i32: 0>} : vector<128x16xi32>
    %11 = arith.sitofp %10 : vector<128x16xi32> to vector<128x16xf32>
    %cst_7 = arith.constant 5.000000e-01 : f32
    %12 = vector.broadcast %cst_7 : f32 to vector<128x16xf32>
    %13 = arith.addf %11, %12 : vector<128x16xf32>
    %cst_8 = arith.constant 6.250000e-02 : f32
    %14 = vector.broadcast %cst_8 : f32 to vector<128x16xf32>
    %15 = arith.mulf %13, %14 : vector<128x16xf32>
    %16 = math.floor %15 : vector<128x16xf32>
    %cst_9 = arith.constant 1.600000e+01 : f32
    %17 = vector.broadcast %cst_9 : f32 to vector<128x16xf32>
    %18 = arith.mulf %16, %17 : vector<128x16xf32>
    %19 = arith.subf %11, %18 : vector<128x16xf32>
    %20 = tpu.iota {dimensions = array<i32: 1>} : vector<128x16xi32>
    %21 = arith.sitofp %20 : vector<128x16xi32> to vector<128x16xf32>
    %22 = arith.cmpf oeq, %19, %21 : vector<128x16xf32>
    %cst_10 = arith.constant 1.000000e+00 : f32
    %cst_11 = arith.constant 0.000000e+00 : f32
    %23 = vector.broadcast %cst_10 : f32 to vector<128x16xf32>
    %24 = vector.broadcast %cst_11 : f32 to vector<128x16xf32>
    %25 = arith.select %22, %23, %24 : vector<128x16xi1>, vector<128x16xf32>
    %26 = tpu.iota {dimensions = array<i32: 1>} : vector<16x128xi32>
    %27 = arith.sitofp %26 : vector<16x128xi32> to vector<16x128xf32>
    %cst_12 = arith.constant 5.000000e-01 : f32
    %28 = vector.broadcast %cst_12 : f32 to vector<16x128xf32>
    %29 = arith.addf %27, %28 : vector<16x128xf32>
    %cst_13 = arith.constant 6.250000e-02 : f32
    %30 = vector.broadcast %cst_13 : f32 to vector<16x128xf32>
    %31 = arith.mulf %29, %30 : vector<16x128xf32>
    %32 = math.floor %31 : vector<16x128xf32>
    %cst_14 = arith.constant 1.600000e+01 : f32
    %33 = vector.broadcast %cst_14 : f32 to vector<16x128xf32>
    %34 = arith.mulf %32, %33 : vector<16x128xf32>
    %35 = arith.subf %27, %34 : vector<16x128xf32>
    %36 = tpu.iota {dimensions = array<i32: 0>} : vector<16x128xi32>
    %37 = arith.sitofp %36 : vector<16x128xi32> to vector<16x128xf32>
    %38 = arith.cmpf oeq, %35, %37 : vector<16x128xf32>
    %cst_15 = arith.constant 1.000000e+00 : f32
    %cst_16 = arith.constant 0.000000e+00 : f32
    %39 = vector.broadcast %cst_15 : f32 to vector<16x128xf32>
    %40 = vector.broadcast %cst_16 : f32 to vector<16x128xf32>
    %41 = arith.select %38, %39, %40 : vector<16x128xi1>, vector<16x128xf32>
    %cst_17 = arith.constant dense<0.000000e+00> : vector<16x128xf32>
    %42 = tpu.matmul %7, %41, %cst_17 {dimension_numbers = #tpu.dot_dimension_numbers<[1], [0], [0], [1], [0, 0, 1, 1], [], []>} : vector<16x16xf32>, vector<16x128xf32>, vector<16x128xf32> -> vector<16x128xf32>
    %cst_18 = arith.constant dense<0.000000e+00> : vector<128x128xf32>
    %43 = tpu.matmul %25, %42, %cst_18 {dimension_numbers = #tpu.dot_dimension_numbers<[1], [0], [0], [1], [0, 0, 1, 1], [], []>} : vector<128x16xf32>, vector<16x128xf32>, vector<128x128xf32> -> vector<128x128xf32>
    %44 = tpu.iota {dimensions = array<i32: 0>} : vector<128x128xi32>
    %45 = arith.sitofp %44 : vector<128x128xi32> to vector<128x128xf32>
    %cst_19 = arith.constant 5.000000e-01 : f32
    %46 = vector.broadcast %cst_19 : f32 to vector<128x128xf32>
    %47 = arith.addf %45, %46 : vector<128x128xf32>
    %cst_20 = arith.constant 6.250000e-02 : f32
    %48 = vector.broadcast %cst_20 : f32 to vector<128x128xf32>
    %49 = arith.mulf %47, %48 : vector<128x128xf32>
    %50 = math.floor %49 : vector<128x128xf32>
    %51 = tpu.iota {dimensions = array<i32: 1>} : vector<128x128xi32>
    %52 = arith.sitofp %51 : vector<128x128xi32> to vector<128x128xf32>
    %cst_21 = arith.constant 5.000000e-01 : f32
    %53 = vector.broadcast %cst_21 : f32 to vector<128x128xf32>
    %54 = arith.addf %52, %53 : vector<128x128xf32>
    %cst_22 = arith.constant 6.250000e-02 : f32
    %55 = vector.broadcast %cst_22 : f32 to vector<128x128xf32>
    %56 = arith.mulf %54, %55 : vector<128x128xf32>
    %57 = math.floor %56 : vector<128x128xf32>
    %58 = arith.cmpf oeq, %50, %57 : vector<128x128xf32>
    %cst_23 = arith.constant 0.000000e+00 : f32
    %59 = vector.broadcast %cst_23 : f32 to vector<128x128xf32>
    %60 = arith.select %58, %43, %59 : vector<128x128xi1>, vector<128x128xf32>
    %cst_24 = arith.constant dense<0.000000e+00> : vector<16x128xf32>
    %61 = tpu.matmul %9, %60, %cst_24 {dimension_numbers = #tpu.dot_dimension_numbers<[1], [0], [0], [1], [0, 0, 1, 1], [], []>} : vector<16x128xf32>, vector<128x128xf32>, vector<16x128xf32> -> vector<16x128xf32>
    %c0_25 = arith.constant 0 : index
    %c0_26 = arith.constant 0 : index
    %62 = vector.load %arg3[%c0_25, %c0_26] : memref<16x128xf32, #tpu.memory_space<vmem>>, vector<16x128xf32>
    tpu.vector_store %arg3[%c0_25, %c0_26], %61 {strides = array<i32>} : memref<16x128xf32, #tpu.memory_space<vmem>>, vector<16x128xf32>,
    return
  }
}

module attributes {stable_mosaic.version = 11 : i64} {
  func.func @_log_tangent_mean_kernel(%arg0: memref<16x128xf32, #tpu.memory_space<vmem>>, %arg1: memref<1x128xf32, #tpu.memory_space<vmem>>, %arg2: memref<16x16xf32, #tpu.memory_space<vmem>>) attributes {dimension_semantics = [], scalar_prefetch = 0 : i64, scratch_operands = 0 : i64, tpu.core_type = #tpu.core_type<tc>} {
    %c0 = arith.constant 0 : index
    %c0_0 = arith.constant 0 : index
    %0 = vector.load %arg0[%c0, %c0_0] : memref<16x128xf32, #tpu.memory_space<vmem>>, vector<16x128xf32>
    %c0_1 = arith.constant 0 : index
    %c0_2 = arith.constant 0 : index
    %1 = vector.load %arg1[%c0_1, %c0_2] : memref<1x128xf32, #tpu.memory_space<vmem>>, vector<1x128xf32>
    %cst = arith.constant 1.000000e-30 : f32
    %2 = vector.broadcast %cst : f32 to vector<1x128xf32>
    %3 = arith.maximumf %1, %2 : vector<1x128xf32>
    %4 = math.log %3 : vector<1x128xf32>
    %5 = vector.broadcast %4 : vector<1x128xf32> to vector<16x128xf32>
    %6 = arith.mulf %0, %5 : vector<16x128xf32>
    %cst_3 = arith.constant dense<0.000000e+00> : vector<16x16xf32>
    %7 = tpu.matmul %6, %0, %cst_3 {dimension_numbers = #tpu.dot_dimension_numbers<[1], [1], [0], [0], [0, 0, 1, 0], [], []>} : vector<16x128xf32>, vector<16x128xf32>, vector<16x16xf32> -> vector<16x16xf32>
    %cst_4 = arith.constant 1.250000e-01 : f32
    %8 = vector.broadcast %cst_4 : f32 to vector<16x16xf32>
    %9 = arith.mulf %7, %8 : vector<16x16xf32>
    %c0_5 = arith.constant 0 : index
    %c0_6 = arith.constant 0 : index
    %10 = vector.load %arg2[%c0_5, %c0_6] : memref<16x16xf32, #tpu.memory_space<vmem>>, vector<16x16xf32>
    tpu.vector_store %arg2[%c0_5, %c0_6], %9 {strides = array<i32>} : memref<16x16xf32, #tpu.memory_space<vmem>>, vector<16x16xf32>,
    return
  }
}

module attributes {stable_mosaic.version = 11 : i64} {
  func.func @_normalize_kernel(%arg0: memref<1xf32, #tpu.memory_space<smem>>, %arg1: memref<16x128xf32, #tpu.memory_space<vmem>>, %arg2: memref<128x16xf32, #tpu.memory_space<vmem>>, %arg3: memref<1x128xf32, #tpu.memory_space<vmem>>, %arg4: memref<16x128xf32, #tpu.memory_space<vmem>>) attributes {dimension_semantics = [], scalar_prefetch = 0 : i64, scratch_operands = 0 : i64, tpu.core_type = #tpu.core_type<tc>} {
    %c0 = arith.constant 0 : index
    %c0_0 = arith.constant 0 : index
    %0 = vector.load %arg3[%c0, %c0_0] : memref<1x128xf32, #tpu.memory_space<vmem>>, vector<1x128xf32>
    %cst = arith.constant 1.000000e-30 : f32
    %1 = vector.broadcast %cst : f32 to vector<1x128xf32>
    %2 = arith.maximumf %0, %1 : vector<1x128xf32>
    %3 = math.log %2 : vector<1x128xf32>
    %4 = arith.mulf %3, %3 : vector<1x128xf32>
    %cst_1 = arith.constant dense<0.000000e+00> : vector<1xf32>
    %5 = vector.multi_reduction <add>, %4, %cst_1 [1] : vector<1x128xf32> to vector<1xf32>
    %6 = vector.shape_cast %5 : vector<1xf32> to vector<1x1xf32>
    %cst_2 = arith.constant 1.250000e-01 : f32
    %7 = vector.broadcast %cst_2 : f32 to vector<1x1xf32>
    %8 = arith.mulf %6, %7 : vector<1x1xf32>
    %c0_3 = arith.constant 0 : index
    %9 = memref.load %arg0[%c0_3] : memref<1xf32, #tpu.memory_space<smem>>
    %10 = math.sqrt %8 : vector<1x1xf32>
    %cst_4 = arith.constant 9.99999974E-6 : f32
    %11 = vector.broadcast %cst_4 : f32 to vector<1x1xf32>
    %12 = arith.addf %10, %11 : vector<1x1xf32>
    %13 = vector.broadcast %9 : f32 to vector<1x1xf32>
    %14 = arith.divf %13, %12 : vector<1x1xf32>
    %15 = vector.broadcast %14 : vector<1x1xf32> to vector<1x128xf32>
    %16 = arith.mulf %15, %3 : vector<1x128xf32>
    %17 = math.exp %16 : vector<1x128xf32>
    %c0_5 = arith.constant 0 : index
    %c0_6 = arith.constant 0 : index
    %18 = vector.load %arg1[%c0_5, %c0_6] : memref<16x128xf32, #tpu.memory_space<vmem>>, vector<16x128xf32>
    %19 = vector.broadcast %17 : vector<1x128xf32> to vector<16x128xf32>
    %20 = arith.mulf %18, %19 : vector<16x128xf32>
    %c0_7 = arith.constant 0 : index
    %c0_8 = arith.constant 0 : index
    %21 = vector.load %arg2[%c0_7, %c0_8] : memref<128x16xf32, #tpu.memory_space<vmem>>, vector<128x16xf32>
    %22 = tpu.iota {dimensions = array<i32: 1>} : vector<16x128xi32>
    %23 = arith.sitofp %22 : vector<16x128xi32> to vector<16x128xf32>
    %cst_9 = arith.constant 5.000000e-01 : f32
    %24 = vector.broadcast %cst_9 : f32 to vector<16x128xf32>
    %25 = arith.addf %23, %24 : vector<16x128xf32>
    %cst_10 = arith.constant 6.250000e-02 : f32
    %26 = vector.broadcast %cst_10 : f32 to vector<16x128xf32>
    %27 = arith.mulf %25, %26 : vector<16x128xf32>
    %28 = math.floor %27 : vector<16x128xf32>
    %cst_11 = arith.constant 1.600000e+01 : f32
    %29 = vector.broadcast %cst_11 : f32 to vector<16x128xf32>
    %30 = arith.mulf %28, %29 : vector<16x128xf32>
    %31 = arith.subf %23, %30 : vector<16x128xf32>
    %32 = tpu.iota {dimensions = array<i32: 0>} : vector<16x128xi32>
    %33 = arith.sitofp %32 : vector<16x128xi32> to vector<16x128xf32>
    %34 = arith.cmpf oeq, %31, %33 : vector<16x128xf32>
    %cst_12 = arith.constant 1.000000e+00 : f32
    %cst_13 = arith.constant 0.000000e+00 : f32
    %35 = vector.broadcast %cst_12 : f32 to vector<16x128xf32>
    %36 = vector.broadcast %cst_13 : f32 to vector<16x128xf32>
    %37 = arith.select %34, %35, %36 : vector<16x128xi1>, vector<16x128xf32>
    %cst_14 = arith.constant dense<0.000000e+00> : vector<128x128xf32>
    %38 = tpu.matmul %21, %37, %cst_14 {dimension_numbers = #tpu.dot_dimension_numbers<[1], [0], [0], [1], [0, 0, 1, 1], [], []>} : vector<128x16xf32>, vector<16x128xf32>, vector<128x128xf32> -> vector<128x128xf32>
    %39 = tpu.iota {dimensions = array<i32: 0>} : vector<128x128xi32>
    %40 = arith.sitofp %39 : vector<128x128xi32> to vector<128x128xf32>
    %cst_15 = arith.constant 5.000000e-01 : f32
    %41 = vector.broadcast %cst_15 : f32 to vector<128x128xf32>
    %42 = arith.addf %40, %41 : vector<128x128xf32>
    %cst_16 = arith.constant 6.250000e-02 : f32
    %43 = vector.broadcast %cst_16 : f32 to vector<128x128xf32>
    %44 = arith.mulf %42, %43 : vector<128x128xf32>
    %45 = math.floor %44 : vector<128x128xf32>
    %46 = tpu.iota {dimensions = array<i32: 1>} : vector<128x128xi32>
    %47 = arith.sitofp %46 : vector<128x128xi32> to vector<128x128xf32>
    %cst_17 = arith.constant 5.000000e-01 : f32
    %48 = vector.broadcast %cst_17 : f32 to vector<128x128xf32>
    %49 = arith.addf %47, %48 : vector<128x128xf32>
    %cst_18 = arith.constant 6.250000e-02 : f32
    %50 = vector.broadcast %cst_18 : f32 to vector<128x128xf32>
    %51 = arith.mulf %49, %50 : vector<128x128xf32>
    %52 = math.floor %51 : vector<128x128xf32>
    %53 = arith.cmpf oeq, %45, %52 : vector<128x128xf32>
    %cst_19 = arith.constant 0.000000e+00 : f32
    %54 = vector.broadcast %cst_19 : f32 to vector<128x128xf32>
    %55 = arith.select %53, %38, %54 : vector<128x128xi1>, vector<128x128xf32>
    %cst_20 = arith.constant dense<0.000000e+00> : vector<16x128xf32>
    %56 = tpu.matmul %20, %55, %cst_20 {dimension_numbers = #tpu.dot_dimension_numbers<[1], [0], [0], [1], [0, 0, 1, 1], [], []>} : vector<16x128xf32>, vector<128x128xf32>, vector<16x128xf32> -> vector<16x128xf32>
    %c0_21 = arith.constant 0 : index
    %c0_22 = arith.constant 0 : index
    %57 = vector.load %arg4[%c0_21, %c0_22] : memref<16x128xf32, #tpu.memory_space<vmem>>, vector<16x128xf32>
    tpu.vector_store %arg4[%c0_21, %c0_22], %56 {strides = array<i32>} : memref<16x128xf32, #tpu.memory_space<vmem>>, vector<16x128xf32>,
    return
  }
}

</mosaic_0001>

<bundles_post_ra>
// kernel: custom-call.7
= control target key start
LH: loop header
LB: loop body
LE: loop exit
PB: predicated region body
PF: predicated region fallthrough
CT: control target
= control target key end

     0   :  { %s2361_s30 = smov [#allocation0]   ;;  %s2721_s0 = inlined_call_operand.vmem [shape: f32[8,8], index: 0, kind: input, shape index: {}]   ;;  %s2722_s1 = inlined_call_operand.vmem [shape: f32[8,8], index: 1, kind: input, shape index: {}]   ;;  %s2723_s2 = inlined_call_operand.vmem [shape: f32[8,8], index: 2, kind: input, shape index: {}]   ;;  %s2724_s3 = inlined_call_operand.vmem [shape: f32[8,8], index: 3, kind: input, shape index: {}]   ;;  %s2725_s4 = inlined_call_operand.vmem [shape: f32[8], index: 4, kind: output, shape index: {0}]   ;;  %s2726_s5 = inlined_call_operand.vmem [shape: f32[8], index: 5, kind: output, shape index: {1}]   ;;  %s2727_s6 = inlined_call_operand.vmem [shape: f32[8,8], index: 6, kind: output, shape index: {2}]   ;;  %s2728_s7 = inlined_call_operand.vmem [shape: f32[8,8], index: 7, kind: output, shape index: {3}]   ;;  %s2729_s8 = inlined_call_operand.vmem [shape: f32[8,8], index: 8, kind: output, shape index: {4}]   ;;  %s2730_s9 = inlined_call_operand.vmem [shape: f32[8,8], index: 9, kind: output, shape index: {5}]  }
   0x1   :  { %s2365_s12 = smov %s2721_s0  }
   0x2 LB: > { %v54_v0 = vld [vmem:[%s2367_s12] sm:$0xff]  ;;  %s56_s12 = scalar_lea.vmem %s2367_s12, 8   ;;  %s2367_s12 = sphi %s2365_s12, %s56_s12   ;;  %s2363_s30 = sphi %s2361_s30, %s57_s30  }
   0x3   : > { %55 = vst [vmem:[%s2363_s30] sm:$0xff] %v54_v0  ;;  %s57_s30 = scalar_lea.vmem %s2363_s30, 8   ;;  %p51_p0 = scmp.gt.s32.totalorder %s56_s12, %s2721_s0 }
   0x4   :  { %s2369_s15 = smov (%p51_p0), [#allocation1]   ;;  %s2373_s18 = smov (%p51_p0), %s2722_s1  }
   0x5   :  { %53 = sbr.rel (!%p51_p0) target bundleno = 2 (0x2), region = 358 }
   0xa LB: > { %v110_v1 = vld [vmem:[%s2375_s18] sm:$0xff]  ;;  %s112_s18 = scalar_lea.vmem %s2375_s18, 8   ;;  %s2375_s18 = sphi %s2373_s18, %s112_s18   ;;  %s2371_s15 = sphi %s2369_s15, %s113_s15  }
   0xb   : > { %111 = vst [vmem:[%s2371_s15] sm:$0xff] %v110_v1  ;;  %s113_s15 = scalar_lea.vmem %s2371_s15, 8   ;;  %p107_p1 = scmp.gt.s32.totalorder %s112_s18, %s2722_s1 }
   0xc   :  { %s2377_s0 = smov (%p107_p1), [#allocation2]   ;;  %s2381_s23 = smov (%p107_p1), %s2723_s2  }
   0xd   :  { %109 = sbr.rel (!%p107_p1) target bundleno = 10 (0xa), region = 380 }
  0x12 LB: > { %v166_v2 = vld [vmem:[%s2383_s23] sm:$0xff]  ;;  %s168_s23 = scalar_lea.vmem %s2383_s23, 8   ;;  %s2383_s23 = sphi %s2381_s23, %s168_s23   ;;  %s2379_s0 = sphi %s2377_s0, %s169_s0  }
  0x13   : > { %167 = vst [vmem:[%s2379_s0] sm:$0xff] %v166_v2  ;;  %s169_s0 = scalar_lea.vmem %s2379_s0, 8   ;;  %p163_p2 = scmp.gt.s32.totalorder %s168_s23, %s2723_s2 }
  0x14   :  { %s2385_s1 = smov (%p163_p2), [#allocation3]   ;;  %s2389_s28 = smov (%p163_p2), %s2724_s3  }
  0x15   :  { %165 = sbr.rel (!%p163_p2) target bundleno = 18 (0x12), region = 402 }
  0x1a LB: > { %v222_v3 = vld [vmem:[%s2391_s28] sm:$0xff]  ;;  %s224_s28 = scalar_lea.vmem %s2391_s28, 8   ;;  %s2391_s28 = sphi %s2389_s28, %s224_s28   ;;  %s2387_s1 = sphi %s2385_s1, %s225_s1  }
  0x1b   : > { %223 = vst [vmem:[%s2387_s1] sm:$0xff] %v222_v3  ;;  %s225_s1 = scalar_lea.vmem %s2387_s1, 8   ;;  %p219_p3 = scmp.gt.s32.totalorder %s224_s28, %s2724_s3 }
  0x1c   :  { %s235_s2 = smov (%p219_p3), [#allocation12]  ;;  %v236_v4 = vld [vmem:[#allocation0] sm:$0xff] (%p219_p3)  ;;  %s238_s10 = smov (%p219_p3), [#allocation13]  ;;  %v239_v5 = vld [vmem:[#allocation1] sm:$0xff] (%p219_p3)  ;;  %v242_v6 = vld [vmem:[#allocation2] sm:$0xff] (%p219_p3)  ;;  %v252_v7 = vlaneseq (%p219_p3)  ;;  %v2433_v11 = vmov (%p219_p3), 0.0  }
  0x1d   :  { %221 = sbr.rel (!%p219_p3) target bundleno = 26 (0x1a), region = 424  ;;  %237 = vst [vmem:[%s235_s2] sm:$0xff] (%p219_p3), %v236_v4  ;;  %s241_s11 = smov (%p219_p3), [#allocation14] }
  0x1e   :  { %s244_s12 = smov (%p219_p3), [#allocation15]  ;;  %240 = vst [vmem:[%s238_s10] sm:$0xff] (%p219_p3), %v239_v5  ;;  %v2510_v9 = vand.u32 (%p219_p3), 127, %v252_v7  ;;  %v2512_v10 = vshrl.u32 (%p219_p3), %v252_v7, 7  ;;  %s251_s3 = smov (%p219_p3), [#allocation8] }
  0x1f   :  { %243 = vst [vmem:[%s241_s11] sm:$0xff] (%p219_p3), %v242_v6  ;;  %s264_s13 = smov (%p219_p3), [#allocation11]  ;;  %s1387_s14 = smov (%p219_p3), [#allocation12] }
  0x20   :  { %247 = vst [vmem:[#allocation8] sm:$0xff] (%p219_p3), %v2433_v11  ;;  %v254_v9 = vmov (%p219_p3), %v2510_v9  ;;  %v257_v10 = vmov (%p219_p3), %v2512_v10  ;;  %vm1391_vm2 = vcmp.lt.s32.totalorder (%p219_p3), %v2510_v9, 8  ;;  %s1404_s15 = smov (%p219_p3), [#allocation13]  ;;  %s1421_s16 = smov (%p219_p3), [#allocation14] }
  0x21   :  { %248 = vst [vmem:[#allocation9] sm:$0xff] (%p219_p3), %v2433_v11  ;;  %vm261_vm0 = vcmp.eq.s32.totalorder (%p219_p3), %v257_v10, %v254_v9  ;;  %v267_v9 = vmov (%p219_p3), %v2510_v9  ;;  %v270_v10 = vmov (%p219_p3), %v2512_v10  ;;  %s1438_s17 = smov (%p219_p3), [#allocation15] }
  0x22   :  { %v245_v8 = vld [vmem:[#allocation3] sm:$0xff]  ;;  %249 = vst [vmem:[#allocation10] sm:$0xff] %v2433_v11  ;;  %vm274_vm1 = vcmp.eq.s32.totalorder %v270_v10, %v267_v9  ;;  %v1383_v9 = vmov %v2510_v9  ;;  %v1386_v10 = vmov %v2512_v10 }
  0x23   :  { %246 = vst [vmem:[%s244_s12] sm:$0xff] %v245_v8  ;;  %v1400_v9 = vmov %v2510_v9  ;;  %v1403_v10 = vmov %v2512_v10  ;;  %vm1396_vm3 = vcmp.eq.s32.totalorder %v1386_v10, %v1383_v9 }
  0x24   :  { %250 = vst [vmem:[#allocation11] sm:$0xff] %v2433_v11  ;;  %v1393_v16 = vld [vmem:[%s1387_s14] sm:$0xff]  ;;  %v1417_v9 = vmov %v2510_v9  ;;  %v1420_v10 = vmov %v2512_v10 }
  0x25   :  { %v1410_v17 = vld [vmem:[%s1404_s15] sm:$0xff]  ;;  %v1394_v18 = vsel %vm1391_vm2, %v1393_v16, 0.0  ;;  %v1434_v9 = vmov %v2510_v9  ;;  %v1437_v10 = vmov %v2512_v10 }
  0x26   :  { %v1411_v19 = vsel %vm1391_vm2, %v1410_v17, 0.0  ;;  %v1427_v20 = vld [vmem:[%s1421_s16] sm:$0xff]  ;;  %v1395_v22 = vmul.f32 %v1394_v18, %v1394_v18  ;;  %vm1447_vm4 = vcmp.eq.s32.totalorder %v1437_v10, %v1434_v9 }
  0x27   :  { %v258_v12 = vld [vmem:[%s251_s3] sm:$0xff]  ;;  %v1412_v23 = vmul.f32 %v1411_v19, %v1411_v19  ;;  %v1428_v24 = vsel %vm1391_vm2, %v1427_v20, 0.0 }
  0x28   :  { %v262_v13 = vsel %vm261_vm0, 1.0, %v258_v12  ;;  %v1429_v26 = vmul.f32 %v1428_v24, %v1428_v24  ;;  %v1397_v29 = vsel %vm1396_vm3, 0.0, %v1395_v22 }
  0x29   :  { %263 = vst [vmem:[%s251_s3] sm:$0xff] %v262_v13  ;;  %v1414_v27 = vadd.f32 %v1412_v23, %v1395_v22  ;;  %v1413_v31 = vadd.f32 %v1412_v23, %v1397_v29 }
  0x2a   :  { %v1444_v21 = vld [vmem:[%s1438_s17] sm:$0xff] }
  0x2b   :  { %v271_v14 = vld [vmem:[%s264_s13] sm:$0xff]  ;;  %v1445_v25 = vsel %vm1391_vm2, %v1444_v21, 0.0  ;;  %v1431_v30 = vadd.f32 %v1429_v26, %v1414_v27  ;;  %v1430_v33 = vadd.f32 %v1429_v26, %v1413_v31 }
  0x2c   :  { %v275_v15 = vsel %vm274_vm1, 1.0, %v271_v14  ;;  %v1446_v28 = vmul.f32 %v1445_v25, %v1445_v25 }
  0x2d   :  { %276 = vst [vmem:[%s264_s13] sm:$0xff] %v275_v15 }
  0x2e   :  { %v1450_v32 = vadd.f32 %v1446_v28, %v1431_v30  ;;  %v1448_v34 = vsel %vm1447_vm4, 0.0, %v1446_v28 }
  0x2f   :  { %v1449_v35 = vadd.f32 %v1448_v34, %v1430_v33 }
  0x30   :  { %1451 = vadd.xlane.f32.xlu0 %v1450_v32 }
  0x38   :  { %1459 = vadd.xlane.f32.xlu0 %v1449_v35 }
  0xa3   :  { %v1452_v36 = vpop.xlane.xlu0 %1451 }
  0xa4   :  { %v1453_v37 = vrot.slane %v1452_v36, 4 }
  0xa6   :  { %v1454_v38 = vadd.f32 %v1453_v37, %v1452_v36 }
  0xa8   :  { %v1455_v39 = vrot.slane %v1454_v38, 2 }
  0xaa   :  { %v1456_v43 = vadd.f32 %v1455_v39, %v1454_v38 }
  0xab   :  { %v1460_v40 = vpop.xlane.xlu0 %1459 }
  0xac   :  { %v1461_v41 = vrot.slane %v1460_v40, 4  ;;  %v1457_v46 = vrot.slane %v1456_v43, 1 }
  0xae   :  { %v1462_v42 = vadd.f32 %v1461_v41, %v1460_v40  ;;  %v1458_v49 = vadd.f32 %v1457_v46, %v1456_v43 }
  0xb0   :  { %v1463_v44 = vrot.slane %v1462_v42, 2 }
  0xb2   :  { %v1464_v45 = vadd.f32 %v1463_v44, %v1462_v42 }
  0xb4   :  { %v1465_v47 = vrot.slane %v1464_v45, 1 }
  0xb6   :  { %v1466_v48 = vadd.f32 %v1465_v47, %v1464_v45 }
  0xb8   :  { %1642 = vpush %v1466_v48 }
  0xb9   :  { %1644 = vpush %v1458_v49 }
  0xe9   :  { %s1643_s18 = spop %1642 }
  0xea   :  { %s1645_s19 = spop %1644 }
  0xeb   :  { %s1469_s20 = smul.f32 1e-10, %s1645_s19 }
  0xed   :  { %p1470_p4 = scmp.le.f32.partialorder %s1643_s18, %s1469_s20 }
  0xee   :  { %s2535_s0 = smov (!%p1470_p4), 0  }
  0xef   :  { %1473 = sbr.rel (%p1470_p4) target bundleno = 897 (0x381), region = 440 }
  0xf4 LB: > { %s2540_s21 = smov 0   ;;  %s2395_s0 = sphi %s2535_s0, %s2731_s0  }
  0xf5 LB: >> { %s381_s22 = smov [#allocation12]  ;;  %v385_v9 = vmov %v2510_v9  ;;  %v388_v10 = vmov %v2512_v10  ;;  %s401_s23 = smov [#allocation13]  ;;  %s2399_s21 = sphi %s2540_s21, %s380_s21  }
  0xf6   : >> { %v405_v9 = vmov %v2510_v9  ;;  %v408_v10 = vmov %v2512_v10  ;;  %v389_v50 = vld [vmem:[%s381_s22] sm:$0xff]  ;;  %vm392_vm5 = vcmp.eq.s32.totalorder %v388_v10, %v385_v9  ;;  %s421_s24 = smov [#allocation15]  ;;  %s382_s25 = smov [#allocation16] }
  0xf7   : >> { %vm412_vm6 = vcmp.eq.s32.totalorder %v408_v10, %v405_v9  ;;  %v425_v9 = vmov %v2510_v9  ;;  %v428_v10 = vmov %v2512_v10  ;;  %v393_v51 = vsel %vm392_vm5, %v389_v50, 0.0  ;;  %v409_v52 = vld [vmem:[%s401_s23] sm:$0xff]  ;;  %s402_s1 = smov [#allocation17]  ;;  %s422_s26 = smov [#allocation18] }
  0xf8   : >> { %vm432_vm7 = vcmp.eq.s32.totalorder %v428_v10, %v425_v9  ;;  %v394_v53 = vrot.slane %v393_v51, 4  ;;  %v413_v54 = vsel %vm412_vm6, %v409_v52, 0.0  ;;  %v429_v55 = vld [vmem:[%s421_s24] sm:$0xff]  ;;  %s445_s27 = smov [#allocation17]  ;;  %s443_s28 = smov [#allocation16]  ;;  %v534_v9 = vmov %v2510_v9 }
  0xf9   : >> { %v414_v56 = vrot.slane %v413_v54, 4  ;;  %v433_v57 = vsel %vm432_vm7, %v429_v55, 0.0  ;;  %s447_s29 = smov [#allocation18]  ;;  %s522_s30 = smov [#allocation19]  ;;  %v537_v10 = vmov %v2512_v10 }
  0xfa   : >> { %v395_v58 = vadd.f32 %v394_v53, %v393_v51  ;;  %v434_v59 = vrot.slane %v433_v57, 4  ;;  %s524_s2 = smov [#allocation20]  ;;  %s441_s10 = smov [#allocation21] }
  0xfb   : >> { %v415_v60 = vadd.f32 %v414_v56, %v413_v54  ;;  %s442_s11 = smov [#allocation22]  ;;  %s526_s10 = smov %s441_s10 }
  0xfc   : >> { %v396_v61 = vrot.slane %v395_v58, 2  ;;  %v435_v62 = vadd.f32 %v434_v59, %v433_v57  ;;  %s528_s11 = smov %s442_s11  ;;  %s530_s12 = smov [#allocation21] }
  0xfd   : >> { %v416_v63 = vrot.slane %v415_v60, 2  ;;  %s545_s3 = smov [#allocation22]  ;;  %s543_s13 = smov [#allocation23] }
  0xfe   : >> { %v397_v0 = vadd.f32 %v396_v61, %v395_v58  ;;  %v436_v1 = vrot.slane %v435_v62, 2  ;;  %s558_s14 = smov [#allocation24]  ;;  %s560_s15 = smov [#allocation23] }
  0xff   : >> { %v417_v2 = vadd.f32 %v416_v63, %v415_v60  ;;  %s2560_s16 = smov [#allocation12]  ;;  %s2562_s17 = smov [#allocation13] }
 0x100   : >> { %v398_v3 = vrot.slane %v397_v0, 1  ;;  %v437_v4 = vadd.f32 %v436_v1, %v435_v62  ;;  %s2564_s18 = smov [#allocation14]  ;;  %s784_s19 = smov [#allocation23] }
 0x101   : >> { %v418_v5 = vrot.slane %v417_v2, 1  ;;  %s2566_s20 = smov [#allocation8]  ;;  %s2568_s22 = smov [#allocation9] }
 0x102   : >> { %v399_v6 = vadd.f32 %v398_v3, %v397_v0  ;;  %v438_v7 = vrot.slane %v437_v4, 1  ;;  %s2570_s23 = smov [#allocation15]  ;;  %s2572_s24 = smov [#allocation10] }
 0x103   : >> { %v419_v8 = vadd.f32 %v418_v5, %v417_v2  ;;  %s380_s21 = sadd.s32 1, %s2399_s21  }
 0x104   : >> { %400 = vst [vmem:[%s382_s25] sm:$0x1] %v399_v6  ;;  %v439_v11 = vadd.f32 %v438_v7, %v437_v4  ;;  %s562_s25 = smov [#allocation24]  ;;  %p377_p5 = scmp.ge.s32.totalorder %s380_s21, 15  }
 0x105   : >> { %420 = vst [vmem:[%s402_s1] sm:$0x1] %v419_v8  ;;  %s786_s1 = smov [#allocation24] }
 0x106   : >> { %440 = vst [vmem:[%s422_s26] sm:$0x1] %v439_v11  ;;  %s2576_s26 = smov [#allocation11] }
 0x10b   : >> { %v444_v19 = vld [vmem:[%s443_s28] sm:$0xff]  ;;  %s590_s28 = smov [#allocation22] }
 0x10c   : >> { %v2551_v12 = vld [vmem:[%s445_s27] sm:$0xff]  ;;  %v498_v43 = vand.u32 2147483647, %v444_v19  ;;  %s588_s27 = smov [#allocation21] }
 0x10d   : >> { %v450_v13 = vmul.f32 2.0, %v2551_v12  ;;  %v448_v20 = vld [vmem:[%s447_s29] sm:$0xff]  ;;  %v499_v51 = vand.u32 2147483647, %v2551_v12  ;;  %s2590_s29 = smov [#allocation14] }
 0x10e   : >> { %v449_v23 = vsub.f32 %v448_v20, %v444_v19  ;;  %v500_v44 = vand.u32 2147483647, %v448_v20 }
 0x10f   : >> { %2121 = vrcp.f32 %v450_v13  ;;  %v462_v16 = vand.u32 2147483648, %v450_v13  ;;  %vm456_vm8 = vweird.f32 %v450_v13  ;;  %v460_v18 = vand.u32 2147483647, %v450_v13 }
 0x110   : >> { %v501_v46 = vmin.f32 %v498_v43, %v500_v44 }
 0x111   : >> { %v463_v22 = vor.u32 1.1754944e-38, %v462_v16  ;;  %vm461_vm11 = vcmp.eq.f32.partialorder %v460_v18, 8.507059e+37  ;;  %v569_v16 = vld [vmem:[%s2562_s17] sm:$0xff] }
 0x112   : >> { %v502_v52 = vmul.f32 1.1920929e-08, %v501_v46 }
 0x114   : >> { %vm503_vm4 = vcmp.le.f32.partialorder %v499_v51, %v502_v52 }
 0x115   : >> { %v2122_v14 = vpop.eup %2121 }
 0x116   : >> { %v452_v15 = vmul.f32 %v2122_v14, %v450_v13  ;;  %vm457_vm9 = vweird.f32 %v2122_v14 }
 0x117   : >> { %vm458_vm10 = vmor %vm456_vm8, %vm457_vm9  ;;  %vm539_vm8 = vcmp.eq.s32.totalorder %v537_v10, %v534_v9  ;;  %v549_v9 = vmov %v2510_v9  ;;  %v552_v10 = vmov %v2512_v10 }
 0x118   : >> { %v453_v17 = vsub.f32 1.0, %v452_v15  ;;  %vm554_vm9 = vcmp.eq.s32.totalorder %v552_v10, %v549_v9  ;;  %v620_v9 = vmov %v2510_v9 }
 0x119   : >> { %v661_v9 = vmov %v2510_v9 }
 0x11a   : >> { %v454_v21 = vmul.f32 %v2122_v14, %v453_v17  ;;  %v570_v17 = vld [vmem:[%s2564_s18] sm:$0xff]  ;;  %v647_v9 = vmov %v2510_v9 }
 0x11c   : >> { %v455_v24 = vadd.f32 %v2122_v14, %v454_v21 }
 0x11e   : >> { %v459_v25 = vsel %vm458_vm10, %v2122_v14, %v455_v24  ;;  %v794_v24 = vld [vmem:[%s2572_s24] sm:$0xff]  ;;  %vm744_vm10 = vcmp.eq.s32.totalorder %v2512_v10, 0 }
 0x11f   : >> { %v464_v26 = vsel %vm461_vm11, %v463_v22, %v459_v25  ;;  %v568_v22 = vld [vmem:[%s2560_s16] sm:$0xff]  ;;  %vm756_vm11 = vcmp.eq.s32.totalorder %v2512_v10, 7  ;;  %v623_v10 = vmov %v2512_v10 }
 0x120   : >> { %v465_v27 = vmul.f32 %v464_v26, %v449_v23  ;;  %v571_v23 = vld [vmem:[%s2570_s23] sm:$0xff]  ;;  %v664_v10 = vmov %v2512_v10 }
 0x121   : >> { %v650_v10 = vmov %v2512_v10 }
 0x122   : >> { %v467_v28 = vmul.f32 %v465_v27, %v465_v27  ;;  %vm466_vm14 = vcmp.ge.f32.partialorder %v465_v27, 0.0 }
 0x124   : >> { %v468_v29 = vadd.f32 1.0, %v467_v28 }
 0x126   : >> { %2123 = vrsqrt.f32 %v468_v29  ;;  %vm476_vm12 = vcmp.eq.f32.partialorder %v468_v29, inf  ;;  %v479_v36 = vand.u32 2147483648, %v468_v29  ;;  %vm478_vm13 = vcmp.eq.f32.partialorder %v468_v29, 0.0 }
 0x12c   : >> { %v2124_v30 = vpop.eup %2123 }
 0x12d   : >> { %v470_v31 = vmul.f32 %v2124_v30, %v468_v29 }
 0x12f   : >> { %v471_v32 = vmul.f32 %v2124_v30, %v470_v31 }
 0x131   : >> { %v472_v33 = vmul.f32 0.5, %v471_v32 }
 0x133   : >> { %v473_v34 = vsub.f32 1.5, %v472_v33 }
 0x135   : >> { %v474_v35 = vmul.f32 %v2124_v30, %v473_v34 }
 0x137   : >> { %v475_v37 = vmul.f32 %v474_v35, %v468_v29 }
 0x139   : >> { %v477_v38 = vsel %vm476_vm12, %v468_v29, %v475_v37  ;;  %v795_v29 = vld [vmem:[%s2576_s26] sm:$0xff]  ;;  %vm628_vm12 = vcmp.eq.s32.totalorder %v623_v10, %v620_v9  ;;  %v634_v9 = vmov %v2510_v9  ;;  %v637_v10 = vmov %v2512_v10 }
 0x13a   : >> { %v480_v39 = vsel %vm478_vm13, %v479_v36, %v477_v38  ;;  %vm669_vm13 = vcmp.eq.s32.totalorder %v664_v10, %v661_v9 }
 0x13b   : >> { %v481_v40 = vxor.u32 2147483648, %v480_v39 }
 0x13d   : >> { %v482_v41 = vsel %vm466_vm14, %v480_v39, %v481_v40  ;;  %vm654_vm14 = vcmp.eq.s32.totalorder %v650_v10, %v647_v9 }
 0x13e   : >> { %v483_v42 = vadd.f32 %v482_v41, %v465_v27 }
 0x140   : >> { %2125 = vrcp.f32 %v483_v42  ;;  %v495_v48 = vand.u32 2147483648, %v483_v42  ;;  %vm489_vm15 = vweird.f32 %v483_v42  ;;  %v493_v50 = vand.u32 2147483647, %v483_v42 }
 0x142   : >> { %v496_v54 = vor.u32 1.1754944e-38, %v495_v48  ;;  %vm494_vm3 = vcmp.eq.f32.partialorder %v493_v50, 8.507059e+37 }
 0x146   : >> { %v2126_v45 = vpop.eup %2125 }
 0x147   : >> { %v485_v47 = vmul.f32 %v2126_v45, %v483_v42  ;;  %vm490_vm0 = vweird.f32 %v2126_v45 }
 0x148   : >> { %vm491_vm1 = vmor %vm489_vm15, %vm490_vm0  ;;  %vm641_vm15 = vcmp.eq.s32.totalorder %v637_v10, %v634_v9  ;;  %vm700_vm0 = vcmp.eq.s32.totalorder %v2510_v9, 7  ;;  %v284_v10 = vmov (%p377_p5), %v2512_v10 }
 0x149   : >> { %v486_v49 = vsub.f32 1.0, %v485_v47 }
 0x14b   : >> { %v487_v53 = vmul.f32 %v2126_v45, %v486_v49 }
 0x14d   : >> { %v488_v55 = vadd.f32 %v2126_v45, %v487_v53 }
 0x14f   : >> { %v492_v56 = vsel %vm491_vm1, %v2126_v45, %v488_v55  ;;  %vm683_vm1 = vcmp.eq.s32.totalorder %v2510_v9, 0 }
 0x150   : >> { %v497_v57 = vsel %vm494_vm3, %v496_v54, %v492_v56  ;;  %vm687_vm3 = vcmp.eq.s32.totalorder %v2510_v9, 1  ;;  %v281_v9 = vmov (%p377_p5), %v2510_v9 }
 0x151   : >> { %v504_v58 = vsel %vm503_vm4, 0.0, %v497_v57  ;;  %vm296_vm4 = vcmp.eq.s32.totalorder (%p377_p5), %v284_v10, %v281_v9  ;;  %v300_v9 = vmov (%p377_p5), %v2510_v9  ;;  %v303_v10 = vmov (%p377_p5), %v2512_v10 }
 0x152   : >> { %v505_v59 = vmul.f32 %v504_v58, %v504_v58  ;;  %v518_v60 = vmul.f32 %v504_v58, %v2551_v12  ;;  %v317_v9 = vmov (%p377_p5), %v2510_v9  ;;  %v320_v10 = vmov (%p377_p5), %v2512_v10 }
 0x153   : > { %v334_v9 = vmov (%p377_p5), %v2510_v9  ;;  %v337_v10 = vmov (%p377_p5), %v2512_v10 }
 0x154   : >> { %v506_v61 = vadd.f32 1.0, %v505_v59  ;;  %v519_v62 = vsub.f32 %v444_v19, %v518_v60  ;;  %v521_v63 = vadd.f32 %v518_v60, %v448_v20  ;;  %v792_v19 = vld [vmem:[%s2566_s20] sm:$0xff] }
 0x155   : >> { %v793_v20 = vld [vmem:[%s2568_s22] sm:$0xff] }
 0x156   : >> { %2127 = vrsqrt.f32 %v506_v61  ;;  %523 = vst [vmem:[%s522_s30] sm:$0xff] %v519_v62  ;;  %vm513_vm5 = vweird.f32 %v506_v61  ;;  %s2592_s30 = smov [#allocation13] }
 0x157   : >> { %525 = vst [vmem:[%s524_s2] sm:$0xff] %v521_v63  ;;  %s812_s2 = smov [#allocation8] }
 0x15c   : >> { %v2128_v0 = vpop.eup %2127 }
 0x15d   : >> { %v508_v1 = vmul.f32 %v2128_v0, %v506_v61  ;;  %vm514_vm6 = vweird.f32 %v2128_v0 }
 0x15e   : >> { %vm515_vm7 = vmor %vm513_vm5, %vm514_vm6  ;;  %vm349_vm5 = vcmp.eq.s32.totalorder (%p377_p5), %v337_v10, %v334_v9 }
 0x15f   : >> { %v509_v2 = vmul.f32 %v2128_v0, %v508_v1 }
 0x161   : >> { %v510_v3 = vmul.f32 0.5, %v509_v2 }
 0x163   : >> { %v511_v4 = vsub.f32 1.5, %v510_v3 }
 0x165   : >> { %v512_v5 = vmul.f32 %v2128_v0, %v511_v4 }
 0x167   : >> { %v516_v6 = vsel %vm515_vm7, %v2128_v0, %v512_v5 }
 0x168   : >> { %527 = vst [vmem:[%s526_s10] sm:$0xff] %v516_v6  ;;  %v517_v7 = vmul.f32 %v516_v6, %v504_v58  ;;  %s813_s10 = smov [#allocation10] }
 0x16a   : >> { %529 = vst [vmem:[%s528_s11] sm:$0xff] %v517_v7  ;;  %s2596_s11 = smov [#allocation9] }
 0x16f   : >> { %v531_v8 = vld [vmem:[%s530_s12] ss:$0 sm:$0xff]  ;;  %s2598_s12 = smov [#allocation11] }
 0x170   : >> { %v540_v11 = vsel %vm539_vm8, %v531_v8, 0.0  ;;  %v589_v52 = vld [vmem:[%s588_s27] ss:$0 sm:$0xff]  ;;  %s737_s27 = smov [#allocation14] }
 0x171   : >> { %541 = vadd.xlane.f32.xlu0 %v540_v11  ;;  %v546_v12 = vld [vmem:[%s545_s3] ss:$0 sm:$0xff]  ;;  %s2603_s3 = smov [#allocation12] }
 0x172   : >> { %v555_v13 = vsel %vm554_vm9, %v546_v12, 0.0  ;;  %v591_v53 = vld [vmem:[%s590_s28] ss:$0 sm:$0xff]  ;;  %s736_s28 = smov [#allocation12] }
 0x179   : >> { %556 = vadd.xlane.f32.xlu0 %v555_v13 }
 0x1e4   : >> { %v542_v14 = vpop.xlane.xlu0 %541 }
 0x1e5   : >> { %544 = vst [vmem:[%s543_s13] sm:$0xff] %v542_v14  ;;  %s595_s13 = smov [#allocation15] }
 0x1ec   : >> { %v557_v15 = vpop.xlane.xlu0 %556  ;;  %v561_v18 = vld [vmem:[%s560_s15] sm:$0xff]  ;;  %s658_s15 = smov [#allocation20] }
 0x1ed   : >> { %559 = vst [vmem:[%s558_s14] sm:$0xff] %v557_v15  ;;  %v785_v21 = vld [vmem:[%s784_s19] sm:$0xff]  ;;  %v575_v25 = vmul.f32 %v569_v16, %v561_v18  ;;  %v579_v26 = vmul.f32 %v570_v17, %v561_v18  ;;  %v572_v46 = vmul.f32 %v568_v22, %v561_v18  ;;  %v582_v48 = vmul.f32 %v571_v23, %v561_v18  ;;  %s617_s14 = smov [#allocation19]  ;;  %s631_s19 = smov [#allocation13] }
 0x1ee   : >> { %v796_v30 = vmul.f32 %v792_v19, %v785_v21  ;;  %v799_v31 = vmul.f32 %v793_v20, %v785_v21  ;;  %v803_v38 = vmul.f32 %v794_v24, %v785_v21  ;;  %v806_v42 = vmul.f32 %v795_v29, %v785_v21 }
 0x1f4   : >> { %v563_v27 = vld [vmem:[%s562_s25] sm:$0xff]  ;;  %s673_s25 = smov [#allocation13] }
 0x1f5   : >> { %v787_v28 = vld [vmem:[%s786_s1] sm:$0xff]  ;;  %v576_v32 = vmul.f32 %v571_v23, %v563_v27  ;;  %v578_v33 = vmul.f32 %v568_v22, %v563_v27  ;;  %v573_v39 = vmul.f32 %v570_v17, %v563_v27  ;;  %v581_v43 = vmul.f32 %v569_v16, %v563_v27  ;;  %s2435_s1 = smov 127  }
 0x1f6   : >> { %v797_v34 = vmul.f32 %v794_v24, %v787_v28  ;;  %v800_v35 = vmul.f32 %v795_v29, %v787_v28  ;;  %v802_v36 = vmul.f32 %v792_v19, %v787_v28  ;;  %v805_v37 = vmul.f32 %v793_v20, %v787_v28  ;;  %v624_v22 = vld [vmem:[%s617_s14] ss:$0 sm:$0xff] }
 0x1f7   : >> { %v577_v40 = vsub.f32 %v575_v25, %v576_v32  ;;  %v580_v41 = vadd.f32 %v579_v26, %v578_v33  ;;  %v574_v50 = vsub.f32 %v572_v46, %v573_v39  ;;  %v583_v51 = vadd.f32 %v582_v48, %v581_v43  ;;  %v665_v23 = vld [vmem:[%s658_s15] ss:$0 sm:$0xff] }
 0x1f8   : >> { %v798_v44 = vsub.f32 %v796_v30, %v797_v34  ;;  %v801_v45 = vsub.f32 %v799_v31, %v800_v35  ;;  %v804_v47 = vadd.f32 %v803_v38, %v802_v36  ;;  %v807_v49 = vadd.f32 %v806_v42, %v805_v37 }
 0x1f9   : >> { %585 = vst [vmem:[%s2562_s17] sm:$0xff] %v577_v40  ;;  %s657_s17 = smov [#allocation15] }
 0x1fa   : >> { %586 = vst [vmem:[%s2564_s18] sm:$0xff] %v580_v41  ;;  %s644_s18 = smov [#allocation14] }
 0x1fb   : >> { %808 = vst [vmem:[%s2566_s20] sm:$0xff] %v798_v44  ;;  %s2634_s20 = smov [#allocation12] }
 0x1fc   : >> { %809 = vst [vmem:[%s2568_s22] sm:$0xff] %v801_v45  ;;  %s2636_s22 = smov [#allocation15] }
 0x1fd   : >> { %810 = vst [vmem:[%s2572_s24] sm:$0xff] %v804_v47  ;;  %s2434_s24 = smov 1  }
 0x1fe   : >> { %811 = vst [vmem:[%s2576_s26] sm:$0xff] %v807_v49  ;;  %s2646_s26 = smov [#allocation13] }
 0x1ff   : >> { %584 = vst [vmem:[%s2560_s16] sm:$0xff] %v574_v50  ;;  %s616_s16 = smov [#allocation12] }
 0x200   : >> { %587 = vst [vmem:[%s2570_s23] sm:$0xff] %v583_v51  ;;  %v597_v55 = vld [vmem:[%s2592_s30] sm:$0xff]  ;;  %s2638_s23 = smov [#allocation14] }
 0x201   : >> { %v598_v54 = vld [vmem:[%s2590_s29] sm:$0xff]  ;;  %v601_v4 = vmul.f32 %v597_v55, %v591_v53  ;;  %v604_v12 = vmul.f32 %v597_v55, %v589_v52 }
 0x202   : >> { %v814_v56 = vld [vmem:[%s812_s2] ss:$0 sm:$0xff]  ;;  %v1613_v58 = vld [vmem:[%s812_s2 + $0x7] ss:$0 sm:$0xff]  ;;  %v609_v7 = vmul.f32 %v598_v54, %v591_v53  ;;  %v606_v8 = vmul.f32 %v598_v54, %v589_v52 }
 0x203   : >> { %v1612_v57 = vld [vmem:[%s812_s2 - $0x1] sm:$0xfe]  ;;  %v1617_v62 = vld [vmem:[%s2596_s11 + $0x7] ss:$0 sm:$0xff] }
 0x204   : >> { %v821_v59 = vsel %vm744_vm10, %v814_v56, %v1612_v57  ;;  %v838_v60 = vld [vmem:[%s2596_s11] ss:$0 sm:$0xff]  ;;  %v1615_v0 = vld [vmem:[%s813_s10 + $0x1] sm:$0x7f] }
 0x205   : >> { %v1616_v61 = vld [vmem:[%s2596_s11 - $0x1] sm:$0xfe]  ;;  %824 = vst [vmem:[%s812_s2] sm:$0xff] %v821_v59  ;;  %v833_v2 = vsel %vm756_vm11, %v1613_v58, %v1615_v0 }
 0x206   : >> { %v825_v63 = vld [vmem:[%s813_s10] ss:$0 sm:$0xff]  ;;  %v845_v1 = vsel %vm744_vm10, %v838_v60, %v1616_v61  ;;  %v1619_v3 = vld [vmem:[%s2598_s12 + $0x1] sm:$0x7f] }
 0x207   : >> { %1614 = vst [vmem:[%s812_s2 + $0x1] sm:$0x1] %v825_v63  ;;  %v849_v5 = vld [vmem:[%s2598_s12] ss:$0 sm:$0xff]  ;;  %v857_v6 = vsel %vm756_vm11, %v1617_v62, %v1619_v3  ;;  %s285_s2 = smov (%p377_p5), [#allocation12] }
 0x208   : >> { %835 = vst [vmem:[%s813_s10] sm:$0xff] %v833_v2  ;;  %v596_v11 = vld [vmem:[%s2603_s3] sm:$0xff]  ;;  %s304_s10 = smov (%p377_p5), [#allocation13] }
 0x209   : >> { %848 = vst [vmem:[%s2596_s11] sm:$0xff] %v845_v1  ;;  %v599_v13 = vld [vmem:[%s595_s13] sm:$0xff]  ;;  %v600_v14 = vmul.f32 %v596_v11, %v589_v52  ;;  %v603_v15 = vmul.f32 %v596_v11, %v591_v53 }
 0x20a   : >> { %1618 = vst [vmem:[%s2596_s11 + $0x1] sm:$0x1] %v849_v5  ;;  %v607_v16 = vmul.f32 %v599_v13, %v591_v53  ;;  %v610_v17 = vmul.f32 %v599_v13, %v589_v52  ;;  %s321_s11 = smov (%p377_p5), [#allocation14] }
 0x20b   : >> { %859 = vst [vmem:[%s2598_s12] sm:$0xff] %v857_v6  ;;  %v602_v18 = vsub.f32 %v600_v14, %v601_v4  ;;  %v605_v21 = vadd.f32 %v604_v12, %v603_v15  ;;  %s338_s12 = smov (%p377_p5), [#allocation15] }
 0x20c   : >> { %v611_v19 = vadd.f32 %v610_v17, %v609_v7  ;;  %v608_v20 = vsub.f32 %v606_v8, %v607_v16 }
 0x20d   : >> { %612 = vst [vmem:[%s2603_s3] sm:$0xff] %v602_v18 }
 0x20e   : >> { %615 = vst [vmem:[%s595_s13] sm:$0xff] %v611_v19 }
 0x20f   : >> { %614 = vst [vmem:[%s2590_s29] sm:$0xff] %v608_v20  ;;  %s761_s29 = smov [#allocation15] }
 0x210   : >> { %613 = vst [vmem:[%s2592_s30] sm:$0xff] %v605_v21  ;;  %s860_s30 = sadd.s32 (%p377_p5), 1, %s2395_s0  }
 0x211   : > { %p373_p6 = scmp.ge.s32.totalorder (%p377_p5), %s860_s30, 15  ;;  %s2731_s0 = smov (%p377_p5), %s860_s30 }
 0x214   : >> { %v625_v24 = vld [vmem:[%s616_s16] sm:$0xff] }
 0x215   : >> { %v666_v25 = vld [vmem:[%s657_s17] sm:$0xff]  ;;  %v629_v26 = vsel %vm628_vm12, %v624_v22, %v625_v24 }
 0x216   : >> { %v670_v27 = vsel %vm669_vm13, %v665_v23, %v666_v25  ;;  %v651_v28 = vld [vmem:[%s644_s18] sm:$0xff]  ;;  %630 = vst [vmem:[%s616_s16] sm:$0xff] %v629_v26 }
 0x217   : >> { %671 = vst [vmem:[%s657_s17] sm:$0xff] %v670_v27  ;;  %v655_v29 = vsel %vm654_vm14, 0.0, %v651_v28  ;;  %v638_v30 = vld [vmem:[%s631_s19] sm:$0xff] }
 0x218   : >> { %656 = vst [vmem:[%s644_s18] sm:$0xff] %v655_v29  ;;  %v642_v31 = vsel %vm641_vm15, 0.0, %v638_v30 }
 0x219   : >> { %643 = vst [vmem:[%s631_s19] sm:$0xff] %v642_v31 }
 0x21d   : >> { %v678_v32 = vld [vmem:[%s2634_s20] sm:$0xff] }
 0x21e   : >> { %v706_v33 = vld [vmem:[%s2636_s22] sm:$0xff]  ;;  %679 = vrot.lane.b32.xlu1 %v678_v32, %s2434_s24 }
 0x21f   : >> { %707 = vrot.lane.b32.xlu0 %v706_v33, %s2434_s24  ;;  %v710_v34 = vld [vmem:[%s2638_s23] sm:$0xff] }
 0x220   : >> { %711 = vrot.lane.b32.xlu2 %v710_v34, %s2434_s24  ;;  %v695_v35 = vld [vmem:[%s673_s25] sm:$0xff] }
 0x226   : >> { %675 = vrot.lane.b32.xlu1 %v695_v35, %s2434_s24 }
 0x228   : >> { %696 = vrot.lane.b32.xlu2 %v695_v35, %s2435_s1 }
 0x22e   : >> { %728 = vrot.lane.b32.xlu1 %v706_v33, %s2435_s1 }
 0x27a   : >> { %v712_v36 = vpop.permute.xlu2 %711 }
 0x27b   : >> { %v716_v44 = vsel %vm683_vm1, %v710_v34, %v712_v36 }
 0x282   : >> { %v697_v37 = vpop.permute.xlu2 %696 }
 0x283   : >> { %v701_v38 = vsel %vm700_vm0, %v678_v32, %v697_v37 }
 0x284   : >> { %703 = vst [vmem:[%s673_s25] sm:$0xff] %v701_v38 }
 0x28b   : >> { %v762_v39 = vld [vmem:[%s2646_s26] ss:$0 sm:$0xff]  ;;  %v1609_v41 = vld [vmem:[%s2646_s26 + $0x7] ss:$0 sm:$0xff] }
 0x28c   : >> { %v1608_v40 = vld [vmem:[%s2646_s26 - $0x1] sm:$0xfe] }
 0x28d   : >> { %v769_v42 = vsel %vm744_vm10, %v762_v39, %v1608_v40 }
 0x28e   : >> { %772 = vst [vmem:[%s2646_s26] sm:$0xff] %v769_v42 }
 0x290   : >> { %v680_v43 = vpop.permute.xlu1 %679 }
 0x291   : >> { %v708_v45 = vpop.permute.xlu0 %707  ;;  %v684_v48 = vsel %vm683_vm1, %v678_v32, %v680_v43 }
 0x292   : >> { %v720_v46 = vsel %vm687_vm3, %v708_v45, %v716_v44 }
 0x293   : >> { %v726_v47 = vsel %vm1391_vm2, %v720_v46, 0.0 }
 0x294   : >> { %734 = vst [vmem:[%s2638_s23] sm:$0xff] %v726_v47 }
 0x298   : >> { %v676_v49 = vpop.permute.xlu1 %675 }
 0x299   : >> { %v688_v50 = vsel %vm687_vm3, %v676_v49, %v684_v48 }
 0x29a   : >> { %v694_v51 = vsel %vm1391_vm2, %v688_v50, 0.0 }
 0x29b   : >> { %702 = vst [vmem:[%s2634_s20] sm:$0xff] %v694_v51  ;;  %v1607_v53 = vld [vmem:[%s737_s27 + $0x1] sm:$0x7f]  ;;  %v749_v60 = vld [vmem:[%s737_s27] ss:$0 sm:$0xff] }
 0x2a0   : >> { %v729_v52 = vpop.permute.xlu1 %728 }
 0x2a1   : >> { %v733_v54 = vsel %vm700_vm0, %v710_v34, %v729_v52 }
 0x2a2   : >> { %v738_v55 = vld [vmem:[%s736_s28] ss:$0 sm:$0xff]  ;;  %v1605_v57 = vld [vmem:[%s736_s28 + $0x7] ss:$0 sm:$0xff]  ;;  %735 = vst [vmem:[%s2636_s22] sm:$0xff] %v733_v54 }
 0x2a3   : >> { %v1604_v56 = vld [vmem:[%s736_s28 - $0x1] sm:$0xfe]  ;;  %v757_v59 = vsel %vm756_vm11, %v1605_v57, %v1607_v53 }
 0x2a4   : >> { %v745_v58 = vsel %vm744_vm10, %v738_v55, %v1604_v56  ;;  %759 = vst [vmem:[%s737_s27] sm:$0xff] %v757_v59 }
 0x2a5   : >> { %748 = vst [vmem:[%s736_s28] sm:$0xff] %v745_v58 }
 0x2a6   : >> { %1606 = vst [vmem:[%s736_s28 + $0x1] sm:$0x1] %v749_v60 }
 0x2a9   : >> { %v773_v61 = vld [vmem:[%s761_s29] ss:$0 sm:$0xff]  ;;  %v1611_v62 = vld [vmem:[%s761_s29 + $0x1] sm:$0x7f] }
 0x2aa   : >> { %1610 = vst [vmem:[%s2646_s26 + $0x1] sm:$0x1] %v773_v61  ;;  %v781_v63 = vsel %vm756_vm11, %v1609_v41, %v1611_v62  ;;  %379 = sbr.rel (!%p377_p5) target bundleno = 245 (0xf5), region = 435 }
 0x2ab   : >> { %783 = vst [vmem:[%s761_s29] sm:$0xff] %v781_v63  ;;  %v327_v4 = vld [vmem:[%s321_s11] sm:$0xff] (%p377_p5) }
 0x2ac   : > { %v328_v8 = vsel (%p377_p5), %vm1391_vm2, %v327_v4, 0.0 }
 0x2ad   : > { %v291_v0 = vld [vmem:[%s285_s2] sm:$0xff] (%p377_p5)  ;;  %v329_v12 = vmul.f32 (%p377_p5), %v328_v8, %v328_v8 }
 0x2ae   : > { %v292_v2 = vsel (%p377_p5), %vm1391_vm2, %v291_v0, 0.0 }
 0x2af   : > { %v293_v6 = vmul.f32 %v292_v2, %v292_v2 }
 0x2b1   : > { %v310_v1 = vld [vmem:[%s304_s10] sm:$0xff]  ;;  %v297_v15 = vsel %vm296_vm4, 0.0, %v293_v6 }
 0x2b2   : > { %v311_v3 = vsel %vm1391_vm2, %v310_v1, 0.0  ;;  %v344_v5 = vld [vmem:[%s338_s12] sm:$0xff] }
 0x2b3   : > { %v312_v7 = vmul.f32 %v311_v3, %v311_v3  ;;  %v345_v11 = vsel %vm1391_vm2, %v344_v5, 0.0 }
 0x2b4   : > { %v346_v14 = vmul.f32 %v345_v11, %v345_v11 }
 0x2b5   : > { %v314_v13 = vadd.f32 %v312_v7, %v293_v6  ;;  %v313_v17 = vadd.f32 %v312_v7, %v297_v15 }
 0x2b6   : > { %v350_v20 = vsel %vm349_vm5, 0.0, %v346_v14 }
 0x2b7   : > { %v331_v16 = vadd.f32 %v329_v12, %v314_v13  ;;  %v330_v19 = vadd.f32 %v329_v12, %v313_v17 }
 0x2b9   : > { %v352_v18 = vadd.f32 %v346_v14, %v331_v16  ;;  %v351_v21 = vadd.f32 %v350_v20, %v330_v19 }
 0x2bb   : > { %353 = vadd.xlane.f32.xlu0 %v352_v18 }
 0x2c3   : > { %361 = vadd.xlane.f32.xlu0 %v351_v21 }
 0x32e   : > { %v354_v22 = vpop.xlane.xlu0 %353 }
 0x32f   : > { %v355_v23 = vrot.slane %v354_v22, 4 }
 0x331   : > { %v356_v24 = vadd.f32 %v355_v23, %v354_v22 }
 0x333   : > { %v357_v25 = vrot.slane %v356_v24, 2 }
 0x335   : > { %v358_v29 = vadd.f32 %v357_v25, %v356_v24 }
 0x336   : > { %v362_v26 = vpop.xlane.xlu0 %361 }
 0x337   : > { %v363_v27 = vrot.slane %v362_v26, 4  ;;  %v359_v32 = vrot.slane %v358_v29, 1 }
 0x339   : > { %v364_v28 = vadd.f32 %v363_v27, %v362_v26  ;;  %v360_v35 = vadd.f32 %v359_v32, %v358_v29 }
 0x33b   : > { %v365_v30 = vrot.slane %v364_v28, 2 }
 0x33d   : > { %v366_v31 = vadd.f32 %v365_v30, %v364_v28 }
 0x33f   : > { %v367_v33 = vrot.slane %v366_v31, 1 }
 0x341   : > { %v368_v34 = vadd.f32 %v367_v33, %v366_v31 }
 0x343   : > { %1646 = vpush %v368_v34 }
 0x344   : > { %1648 = vpush %v360_v35 }
 0x374   : > { %s1647_s21 = spop %1646 }
 0x375   : > { %s1649_s3 = spop %1648 }
 0x376   : > { %s371_s13 = smul.f32 1e-10, %s1649_s3 }
 0x378   : > { %p372_p7 = scmp.le.f32.partialorder %s1647_s21, %s371_s13 }
 0x37a   : > { %p374_p8 = por %p373_p6, %p372_p7 }
 0x37c   :  { %862 = sbr.rel (!%p374_p8) target bundleno = 244 (0xf4), region = 446 }
 0x381 PF:  { %s863_s14 = smov [#allocation12]  ;;  %v867_v9 = vmov %v2510_v9  ;;  %v870_v10 = vmov %v2512_v10  ;;  %s883_s15 = smov [#allocation15] }
 0x382   :  { %v887_v9 = vmov %v2510_v9  ;;  %v890_v10 = vmov %v2512_v10  ;;  %v871_v36 = vld [vmem:[%s863_s14] sm:$0xff]  ;;  %vm874_vm6 = vcmp.eq.s32.totalorder %v870_v10, %v867_v9  ;;  %s864_s0 = smov [#allocation4]  ;;  %s884_s16 = smov [#allocation6] }
 0x383   :  { %vm894_vm7 = vcmp.eq.s32.totalorder %v890_v10, %v887_v9  ;;  %v875_v37 = vsel %vm874_vm6, %v871_v36, 0.0  ;;  %v891_v38 = vld [vmem:[%s883_s15] sm:$0xff]  ;;  %s2401_s24 = smov %s2727_s6   ;;  %s2405_s25 = smov [#allocation8]  }
 0x384   :  { %v876_v39 = vrot.slane %v875_v37, 4  ;;  %v895_v40 = vsel %vm894_vm7, %v891_v38, 0.0 }
 0x385   :  { %v896_v41 = vrot.slane %v895_v40, 4 }
 0x386   :  { %v877_v42 = vadd.f32 %v876_v39, %v875_v37 }
 0x387   :  { %v897_v43 = vadd.f32 %v896_v41, %v895_v40 }
 0x388   :  { %v878_v44 = vrot.slane %v877_v42, 2 }
 0x389   :  { %v898_v45 = vrot.slane %v897_v43, 2 }
 0x38a   :  { %v879_v46 = vadd.f32 %v878_v44, %v877_v42 }
 0x38b   :  { %v899_v47 = vadd.f32 %v898_v45, %v897_v43 }
 0x38c   :  { %v880_v48 = vrot.slane %v879_v46, 1 }
 0x38d   :  { %v900_v49 = vrot.slane %v899_v47, 1 }
 0x38e   :  { %v881_v50 = vadd.f32 %v880_v48, %v879_v46 }
 0x38f   :  { %v901_v51 = vadd.f32 %v900_v49, %v899_v47 }
 0x390   :  { %882 = vst [vmem:[%s864_s0] sm:$0x1] %v881_v50 }
 0x391   :  { %902 = vst [vmem:[%s884_s16] sm:$0x1] %v901_v51 }
 0x397   :  { %v905_v9 = vld [vmem:[#allocation4] sm:$0x1] }
 0x398   :  { %908 = vst [vmem:[#allocation5] sm:$0x1] %v905_v9  ;;  %v911_v10 = vld [vmem:[#allocation6] sm:$0x1] }
 0x399   :  { %914 = vst [vmem:[#allocation7] sm:$0x1] %v911_v10 }
 0x39f   :  { %v971_v52 = vld [vmem:[#allocation5] sm:$0x1] }
 0x3a0   :  { %972 = vst [vmem:[%s2725_s4] sm:$0x1] %v971_v52  ;;  %v1029_v53 = vld [vmem:[#allocation7] sm:$0x1] }
 0x3a1   :  { %1030 = vst [vmem:[%s2726_s5] sm:$0x1] %v1029_v53 }
 0x3a2 LB: > { %v1074_v54 = vld [vmem:[%s2407_s25] sm:$0xff]  ;;  %s1076_s25 = scalar_lea.vmem %s2407_s25, 8   ;;  %s2407_s25 = sphi %s2405_s25, %s1076_s25   ;;  %s2403_s24 = sphi %s2401_s24, %s1077_s24  }
 0x3a3   : > { %1075 = vst [vmem:[%s2403_s24] sm:$0xff] %v1074_v54  ;;  %s1077_s24 = scalar_lea.vmem %s2403_s24, 8   ;;  %p1071_p9 = scmp.gt.s32.totalorder %s1076_s25, [#allocation8] }
 0x3a4   :  { %s2409_s5 = smov (%p1071_p9), %s2728_s7   ;;  %s2413_s26 = smov (%p1071_p9), [#allocation9]  }
 0x3a5   :  { %1073 = sbr.rel (!%p1071_p9) target bundleno = 930 (0x3a2), region = 512 }
 0x3aa LB: > { %v1130_v55 = vld [vmem:[%s2415_s26] sm:$0xff]  ;;  %s1132_s26 = scalar_lea.vmem %s2415_s26, 8   ;;  %s2415_s26 = sphi %s2413_s26, %s1132_s26   ;;  %s2411_s5 = sphi %s2409_s5, %s1133_s5  }
 0x3ab   : > { %1131 = vst [vmem:[%s2411_s5] sm:$0xff] %v1130_v55  ;;  %s1133_s5 = scalar_lea.vmem %s2411_s5, 8   ;;  %p1127_p10 = scmp.gt.s32.totalorder %s1132_s26, [#allocation9] }
 0x3ac   :  { %s2417_s28 = smov (%p1127_p10), %s2729_s8   ;;  %s2421_s29 = smov (%p1127_p10), [#allocation10]  }
 0x3ad   :  { %1129 = sbr.rel (!%p1127_p10) target bundleno = 938 (0x3aa), region = 534 }
 0x3b2 LB: > { %v1186_v56 = vld [vmem:[%s2423_s29] sm:$0xff]  ;;  %s1188_s29 = scalar_lea.vmem %s2423_s29, 8   ;;  %s2423_s29 = sphi %s2421_s29, %s1188_s29   ;;  %s2419_s28 = sphi %s2417_s28, %s1189_s28  }
 0x3b3   : > { %1187 = vst [vmem:[%s2419_s28] sm:$0xff] %v1186_v56  ;;  %s1189_s28 = scalar_lea.vmem %s2419_s28, 8   ;;  %p1183_p11 = scmp.gt.s32.totalorder %s1188_s29, [#allocation10] }
 0x3b4   :  { %s2425_s2 = smov (%p1183_p11), %s2730_s9   ;;  %s2429_s10 = smov (%p1183_p11), [#allocation11]  }
 0x3b5   :  { %1185 = sbr.rel (!%p1183_p11) target bundleno = 946 (0x3b2), region = 556 }
 0x3ba LB: > { %v1242_v57 = vld [vmem:[%s2431_s10] sm:$0xff]  ;;  %s1244_s10 = scalar_lea.vmem %s2431_s10, 8   ;;  %s2431_s10 = sphi %s2429_s10, %s1244_s10   ;;  %s2427_s2 = sphi %s2425_s2, %s1245_s2  }
 0x3bb   : > { %1243 = vst [vmem:[%s2427_s2] sm:$0xff] %v1242_v57  ;;  %s1245_s2 = scalar_lea.vmem %s2427_s2, 8   ;;  %p1239_p12 = scmp.gt.s32.totalorder %s1244_s10, [#allocation11] }
 0x3bd   :  { %1241 = sbr.rel (!%p1239_p12) target bundleno = 954 (0x3ba), region = 578 }

// kernel: custom-call.8
= control target key start
LH: loop header
LB: loop body
LE: loop exit
PB: predicated region body
PF: predicated region fallthrough
CT: control target
= control target key end

     0   :  { %s1712_s30 = smov 0   ;;  %s1714_s10 = smov 0   ;;  %s2042_s0 = inlined_call_operand.vmem [shape: f32[8,8,8], index: 0, kind: input, shape index: {}]   ;;  %s2043_s1 = inlined_call_operand.vmem [shape: f32[8,8,8], index: 1, kind: input, shape index: {}]   ;;  %s2044_s2 = inlined_call_operand.vmem [shape: f32[8,8,8], index: 2, kind: input, shape index: {}]   ;;  %s2045_s3 = inlined_call_operand.vmem [shape: f32[8,8,8], index: 3, kind: input, shape index: {}]   ;;  %s2046_s4 = inlined_call_operand.vmem [shape: f32[8,8], index: 4, kind: output, shape index: {0}]   ;;  %s2047_s5 = inlined_call_operand.vmem [shape: f32[8,8], index: 5, kind: output, shape index: {1}]   ;;  %s2048_s6 = inlined_call_operand.vmem [shape: f32[8,8,8], index: 6, kind: output, shape index: {2}]   ;;  %s2049_s7 = inlined_call_operand.vmem [shape: f32[8,8,8], index: 7, kind: output, shape index: {3}]   ;;  %s2050_s8 = inlined_call_operand.vmem [shape: f32[8,8,8], index: 8, kind: output, shape index: {4}]   ;;  %s2051_s9 = inlined_call_operand.vmem [shape: f32[8,8,8], index: 9, kind: output, shape index: {5}]  }
   0x1   :  { %s1716_s11 = smov 0  }
   0x2 LB: > { %s1728_s12 = sadd.s32 4294967295, %s1649_s11   ;;  %s1731_s13 = sadd.s32 1, %s1649_s11   ;;  %s1649_s11 = sphi %s1716_s11, %s2058_s11   ;;  %s1645_s10 = sphi %s1714_s10, %s2057_s10   ;;  %s1641_s30 = sphi %s1712_s30, %s2056_s30  }
   0x3   : > { %s20_s14 = sshrl.u32 %s1649_s11, 3  ;;  %s21_s15 = sshrl.u32 %s1731_s13, 3 }
   0x4   : > { %s22_s16 = ssub.s32 %s20_s14, %s21_s15  ;;  %s25_s17 = sadd.s32 1, %s1645_s10 }
   0x5   : > { %p23_p0 = scmp.eq.s32.totalorder %s22_s16, 0  ;;  %p35_p1 = scmp.ne.s32.totalorder %s1645_s10, %s1641_s30 }
   0x6   : > { %p36_p2 = scmp.eq.s32.totalorder %s1728_s12, 7  ;;  %p1510_p4 = scmp.ge.s32.totalorder %s1649_s11, 8 }
   0x7   : > { %s1740_s18 = scalar_select %p23_p0, %s1645_s10, %s25_s17  }
   0x8   : > { %p1742_p3 = por %p36_p2, %p35_p1  ;;  %86 = sbr.rel (%p1510_p4) target bundleno = 18 (0x12), region = 16 }
   0x9   : > { %2052 = sst [smem:[#allocation23_spill]] %s1740_s18  ;;  %s88_s20 = sand.u32 (!%p1510_p4), 1, %s1649_s11  }
   0xa   : > { %s1512_s21 = sshll.u32 (!%p1510_p4), %s1649_s11, 3  ;;  %s1511_s22 = sshll.u32 (!%p1510_p4), %s88_s20, 3 }
   0xb   : > { %s92_s25 = scalar_lea.vmem (!%p1510_p4), %s2042_s0, %s1512_s21  ;;  %s90_s26 = scalar_lea.vmem (!%p1510_p4), [#allocation0], %s1511_s22 }
   0xc   : > { %s131_s29 = scalar_lea.vmem (!%p1510_p4), %s2043_s1, %s1512_s21  ;;  %s170_s16 = scalar_lea.vmem (!%p1510_p4), %s2044_s2, %s1512_s21 }
   0xd   : > { %v121_v0 = vld [vmem:[%s92_s25] sm:$0xff]  ;;  %s129_s17 = scalar_lea.vmem [#allocation1], %s1511_s22  ;;  %s209_s23 = scalar_lea.vmem %s2045_s3, %s1512_s21 }
   0xe   : > { %122 = vst [vmem:[%s90_s26] sm:$0xff] %v121_v0  ;;  %v160_v1 = vld [vmem:[%s131_s29] sm:$0xff]  ;;  %s168_s24 = scalar_lea.vmem [#allocation2], %s1511_s22  ;;  %s207_s25 = scalar_lea.vmem [#allocation3], %s1511_s22 }
   0xf   : > { %161 = vst [vmem:[%s129_s17] sm:$0xff] %v160_v1  ;;  %v199_v2 = vld [vmem:[%s170_s16] sm:$0xff] }
  0x10   : > { %200 = vst [vmem:[%s168_s24] sm:$0xff] %v199_v2  ;;  %v238_v3 = vld [vmem:[%s209_s23] sm:$0xff] }
  0x11   : > { %239 = vst [vmem:[%s207_s25] sm:$0xff] %v238_v3 }
  0x12 PF: > { %p1519_p5 = scmp.ge.s32.totalorder %s1649_s11, 1  ;;  %p244_p6 = scmp.lt.s32.totalorder %s1649_s11, 9 }
  0x14   : > { %p245_p7 = pnand %p1519_p5, %p244_p6 }
  0x16   : > { %248 = sbr.rel (%p245_p7) target bundleno = 938 (0x3aa), region = 156 }
  0x1b   : > { %s251_s26 = sand.u32 1, %s1728_s12   ;;  %s285_s27 = sand.u32 1, %s1641_s30   ;;  %v329_v4 = vlaneseq  ;;  %v1659_v9 = vmov 0.0  }
  0x1c   : > { %s1765_s28 = sshll.u32 %s251_s26, 3  ;;  %s1767_s18 = sshll.u32 %s285_s27, 3 }
  0x1d   : > { %v1769_v5 = vand.u32 127, %v329_v4  ;;  %v1771_v6 = vshrl.u32 %v329_v4, 7  ;;  %s253_s11 = scalar_lea.vmem [#allocation0], %s1765_s28  ;;  %s257_s21 = scalar_lea.vmem [#allocation1], %s1765_s28 }
  0x1e   : > { %v313_v7 = vld [vmem:[%s253_s11] sm:$0xff]  ;;  %v316_v8 = vld [vmem:[%s257_s21] sm:$0xff]  ;;  %s1776_s30 = scalar_lea.vmem [#allocation6], %s1765_s28  ;;  %s312_s22 = smov [#allocation10] }
  0x1f   : > { %324 = vst [vmem:[%s1776_s30] sm:$0xff] %v1659_v9  ;;  %s315_s29 = smov [#allocation11]  ;;  %s261_s14 = scalar_lea.vmem [#allocation2], %s1765_s28  ;;  %v331_v5 = vmov %v1769_v5  ;;  %v334_v6 = vmov %v1771_v6  ;;  %vm1399_vm2 = vcmp.lt.s32.totalorder %v1769_v5, 8 }
  0x20   : > { %v319_v10 = vld [vmem:[%s261_s14] sm:$0xff]  ;;  %s1781_s15 = scalar_lea.vmem [#allocation7], %s1765_s28  ;;  %314 = vst [vmem:[%s312_s22] sm:$0xff] %v313_v7  ;;  %s318_s16 = smov [#allocation12]  ;;  %vm338_vm0 = vcmp.eq.s32.totalorder %v334_v6, %v331_v5  ;;  %v344_v5 = vmov %v1769_v5  ;;  %v347_v6 = vmov %v1771_v6 }
  0x21   : > { %325 = vst [vmem:[%s1781_s15] sm:$0xff] %v1659_v9  ;;  %s321_s17 = smov [#allocation13]  ;;  %s265_s20 = scalar_lea.vmem [#allocation3], %s1765_s28  ;;  %vm351_vm1 = vcmp.eq.s32.totalorder %v347_v6, %v344_v5  ;;  %v1391_v5 = vmov %v1769_v5  ;;  %v1394_v6 = vmov %v1771_v6 }
  0x22   : > { %v322_v11 = vld [vmem:[%s265_s20] sm:$0xff]  ;;  %317 = vst [vmem:[%s315_s29] sm:$0xff] %v316_v8  ;;  %s328_s30 = smov %s1776_s30  ;;  %s1789_s23 = scalar_lea.vmem [#allocation8], %s1765_s28  ;;  %v1408_v5 = vmov %v1769_v5  ;;  %v1411_v6 = vmov %v1771_v6  ;;  %vm1404_vm3 = vcmp.eq.s32.totalorder %v1394_v6, %v1391_v5 }
  0x23   : > { %320 = vst [vmem:[%s318_s16] sm:$0xff] %v319_v10  ;;  %s1793_s24 = scalar_lea.vmem [#allocation9], %s1765_s28  ;;  %s287_s25 = scalar_lea.vmem [#allocation4], %s1767_s18  ;;  %v1425_v5 = vmov %v1769_v5  ;;  %v1428_v6 = vmov %v1771_v6 }
  0x24   : > { %323 = vst [vmem:[%s321_s17] sm:$0xff] %v322_v11  ;;  %s293_s26 = scalar_lea.vmem [#allocation5], %s1767_s18  ;;  %s1395_s27 = smov [#allocation10]  ;;  %v1442_v5 = vmov %v1769_v5  ;;  %v1445_v6 = vmov %v1771_v6 }
  0x25   : > { %326 = vst [vmem:[%s1789_s23] sm:$0xff] %v1659_v9  ;;  %s1412_s28 = smov [#allocation11]  ;;  %s1429_s11 = smov [#allocation12]  ;;  %vm1455_vm4 = vcmp.eq.s32.totalorder %v1445_v6, %v1442_v5 }
  0x26   : > { %327 = vst [vmem:[%s1793_s24] sm:$0xff] %v1659_v9  ;;  %v335_v12 = vld [vmem:[%s328_s30] sm:$0xff]  ;;  %s341_s24 = smov %s1793_s24  ;;  %s1446_s21 = smov [#allocation13] }
  0x27   : > { %v339_v13 = vsel %vm338_vm0, 1.0, %v335_v12  ;;  %v1401_v16 = vld [vmem:[%s1395_s27] sm:$0xff] }
  0x28   : > { %340 = vst [vmem:[%s328_s30] sm:$0xff] %v339_v13  ;;  %v1402_v18 = vsel %vm1399_vm2, %v1401_v16, 0.0 }
  0x29   : > { %v1418_v17 = vld [vmem:[%s1412_s28] sm:$0xff]  ;;  %v1403_v22 = vmul.f32 %v1402_v18, %v1402_v18 }
  0x2a   : > { %v1419_v19 = vsel %vm1399_vm2, %v1418_v17, 0.0  ;;  %v1435_v20 = vld [vmem:[%s1429_s11] sm:$0xff] }
  0x2b   : > { %v1452_v21 = vld [vmem:[%s1446_s21] sm:$0xff]  ;;  %v1420_v23 = vmul.f32 %v1419_v19, %v1419_v19  ;;  %v1436_v24 = vsel %vm1399_vm2, %v1435_v20, 0.0  ;;  %v1405_v29 = vsel %vm1404_vm3, 0.0, %v1403_v22 }
  0x2c   : > { %v1453_v25 = vsel %vm1399_vm2, %v1452_v21, 0.0  ;;  %v1437_v26 = vmul.f32 %v1436_v24, %v1436_v24 }
  0x2d   : > { %v348_v14 = vld [vmem:[%s341_s24] sm:$0xff]  ;;  %v1422_v27 = vadd.f32 %v1420_v23, %v1403_v22  ;;  %v1454_v28 = vmul.f32 %v1453_v25, %v1453_v25  ;;  %v1421_v31 = vadd.f32 %v1420_v23, %v1405_v29 }
  0x2e   : > { %v352_v15 = vsel %vm351_vm1, 1.0, %v348_v14 }
  0x2f   : > { %353 = vst [vmem:[%s341_s24] sm:$0xff] %v352_v15  ;;  %v1439_v30 = vadd.f32 %v1437_v26, %v1422_v27  ;;  %v1438_v33 = vadd.f32 %v1437_v26, %v1421_v31  ;;  %v1456_v34 = vsel %vm1455_vm4, 0.0, %v1454_v28 }
  0x31   : > { %v1458_v32 = vadd.f32 %v1454_v28, %v1439_v30  ;;  %v1457_v35 = vadd.f32 %v1456_v34, %v1438_v33 }
  0x33   : > { %1459 = vadd.xlane.f32.xlu0 %v1458_v32 }
  0x3b   : > { %1467 = vadd.xlane.f32.xlu0 %v1457_v35 }
  0xa6   : > { %v1460_v36 = vpop.xlane.xlu0 %1459 }
  0xa7   : > { %v1461_v37 = vrot.slane %v1460_v36, 4 }
  0xa9   : > { %v1462_v38 = vadd.f32 %v1461_v37, %v1460_v36 }
  0xab   : > { %v1463_v39 = vrot.slane %v1462_v38, 2 }
  0xad   : > { %v1464_v43 = vadd.f32 %v1463_v39, %v1462_v38 }
  0xae   : > { %v1468_v40 = vpop.xlane.xlu0 %1467 }
  0xaf   : > { %v1469_v41 = vrot.slane %v1468_v40, 4  ;;  %v1465_v46 = vrot.slane %v1464_v43, 1 }
  0xb1   : > { %v1470_v42 = vadd.f32 %v1469_v41, %v1468_v40  ;;  %v1466_v49 = vadd.f32 %v1465_v46, %v1464_v43 }
  0xb3   : > { %v1471_v44 = vrot.slane %v1470_v42, 2 }
  0xb5   : > { %v1472_v45 = vadd.f32 %v1471_v44, %v1470_v42 }
  0xb7   : > { %v1473_v47 = vrot.slane %v1472_v45, 1 }
  0xb9   : > { %v1474_v48 = vadd.f32 %v1473_v47, %v1472_v45 }
  0xbb   : > { %1560 = vpush %v1474_v48 }
  0xbc   : > { %1562 = vpush %v1466_v49 }
  0xec   : > { %s1561_s22 = spop %1560 }
  0xed   : > { %s1563_s29 = spop %1562 }
  0xee   : > { %s1477_s14 = smul.f32 1e-10, %s1563_s29 }
  0xf0   : > { %p1478_p8 = scmp.le.f32.partialorder %s1561_s22, %s1477_s14 }
  0xf1   : > { %s1818_s16 = smov (!%p1478_p8), 0  }
  0xf2   : > { %1481 = sbr.rel (%p1478_p8) target bundleno = 900 (0x384), region = 507 }
  0xf7 LB: >> { %s1823_s17 = smov 0   ;;  %s1653_s16 = sphi %s1818_s16, %s2054_s16  }
  0xf8 LB: >>> { %s458_s20 = smov [#allocation10]  ;;  %v462_v5 = vmov %v1769_v5  ;;  %v465_v6 = vmov %v1771_v6  ;;  %s478_s27 = smov [#allocation11]  ;;  %s1657_s17 = sphi %s1823_s17, %s457_s17  }
  0xf9   : >>> { %v482_v5 = vmov %v1769_v5  ;;  %v485_v6 = vmov %v1771_v6  ;;  %v466_v50 = vld [vmem:[%s458_s20] sm:$0xff]  ;;  %vm469_vm5 = vcmp.eq.s32.totalorder %v465_v6, %v462_v5  ;;  %s498_s28 = smov [#allocation13]  ;;  %s459_s11 = smov [#allocation14] }
  0xfa   : >>> { %vm489_vm6 = vcmp.eq.s32.totalorder %v485_v6, %v482_v5  ;;  %v502_v5 = vmov %v1769_v5  ;;  %v505_v6 = vmov %v1771_v6  ;;  %v470_v51 = vsel %vm469_vm5, %v466_v50, 0.0  ;;  %v486_v52 = vld [vmem:[%s478_s27] sm:$0xff]  ;;  %s479_s21 = smov [#allocation15]  ;;  %s499_s22 = smov [#allocation16] }
  0xfb   : >>> { %vm509_vm7 = vcmp.eq.s32.totalorder %v505_v6, %v502_v5  ;;  %v471_v53 = vrot.slane %v470_v51, 4  ;;  %v490_v54 = vsel %vm489_vm6, %v486_v52, 0.0  ;;  %v506_v55 = vld [vmem:[%s498_s28] sm:$0xff]  ;;  %s522_s29 = smov [#allocation15]  ;;  %s520_s14 = smov [#allocation14]  ;;  %v611_v5 = vmov %v1769_v5 }
  0xfc   : >>> { %v491_v56 = vrot.slane %v490_v54, 4  ;;  %v510_v57 = vsel %vm509_vm7, %v506_v55, 0.0  ;;  %s524_s20 = smov [#allocation16]  ;;  %s599_s27 = smov [#allocation17]  ;;  %v614_v6 = vmov %v1771_v6 }
  0xfd   : >>> { %v472_v58 = vadd.f32 %v471_v53, %v470_v51  ;;  %v511_v59 = vrot.slane %v510_v57, 4  ;;  %s601_s28 = smov [#allocation18]  ;;  %s1850_s30 = smov %s1776_s30 }
  0xfe   : >>> { %v492_v60 = vadd.f32 %v491_v56, %v490_v54  ;;  %s1853_s15 = smov %s1781_s15  ;;  %s1858_s23 = smov %s1789_s23 }
  0xff   : >>> { %v473_v61 = vrot.slane %v472_v58, 2  ;;  %v512_v62 = vadd.f32 %v511_v59, %v510_v57  ;;  %s1863_s24 = smov %s1793_s24  ;;  %s457_s17 = sadd.s32 1, %s1657_s17  }
 0x100   : >>> { %v493_v63 = vrot.slane %v492_v60, 2  ;;  %p454_p9 = scmp.ge.s32.totalorder %s457_s17, 15  }
 0x101   : >>> { %v474_v0 = vadd.f32 %v473_v61, %v472_v58  ;;  %v513_v1 = vrot.slane %v512_v62, 2 }
 0x102   : >>> { %v494_v2 = vadd.f32 %v493_v63, %v492_v60 }
 0x103   : >>> { %v475_v3 = vrot.slane %v474_v0, 1  ;;  %v514_v4 = vadd.f32 %v513_v1, %v512_v62 }
 0x104   : >>> { %v495_v7 = vrot.slane %v494_v2, 1 }
 0x105   : >>> { %v476_v8 = vadd.f32 %v475_v3, %v474_v0  ;;  %v515_v9 = vrot.slane %v514_v4, 1 }
 0x106   : >>> { %v496_v10 = vadd.f32 %v495_v7, %v494_v2 }
 0x107   : >>> { %477 = vst [vmem:[%s459_s11] sm:$0x1] %v476_v8  ;;  %v516_v11 = vadd.f32 %v515_v9, %v514_v4  ;;  %s518_s11 = smov [#allocation19] }
 0x108   : >>> { %497 = vst [vmem:[%s479_s21] sm:$0x1] %v496_v10  ;;  %s519_s21 = smov [#allocation20]  ;;  %s603_s11 = smov %s518_s11 }
 0x109   : >>> { %517 = vst [vmem:[%s499_s22] sm:$0x1] %v516_v11  ;;  %s605_s21 = smov %s519_s21  ;;  %s607_s22 = smov [#allocation19] }
 0x10e   : >>> { %v521_v19 = vld [vmem:[%s520_s14] sm:$0xff]  ;;  %s620_s14 = smov [#allocation21] }
 0x10f   : >>> { %v1834_v12 = vld [vmem:[%s522_s29] sm:$0xff]  ;;  %v575_v43 = vand.u32 2147483647, %v521_v19  ;;  %s622_s29 = smov [#allocation20] }
 0x110   : >>> { %v527_v13 = vmul.f32 2.0, %v1834_v12  ;;  %v525_v20 = vld [vmem:[%s524_s20] sm:$0xff]  ;;  %v576_v51 = vand.u32 2147483647, %v1834_v12  ;;  %s635_s20 = smov [#allocation22] }
 0x111   : >>> { %v526_v23 = vsub.f32 %v525_v20, %v521_v19  ;;  %v577_v44 = vand.u32 2147483647, %v525_v20 }
 0x112   : >>> { %1611 = vrcp.f32 %v527_v13  ;;  %v539_v16 = vand.u32 2147483648, %v527_v13  ;;  %vm533_vm8 = vweird.f32 %v527_v13  ;;  %v537_v18 = vand.u32 2147483647, %v527_v13 }
 0x113   : >>> { %v578_v46 = vmin.f32 %v575_v43, %v577_v44 }
 0x114   : >>> { %v540_v22 = vor.u32 1.1754944e-38, %v539_v16  ;;  %vm538_vm11 = vcmp.eq.f32.partialorder %v537_v18, 8.507059e+37 }
 0x115   : >>> { %v579_v52 = vmul.f32 1.1920929e-08, %v578_v46 }
 0x117   : >>> { %vm580_vm4 = vcmp.le.f32.partialorder %v576_v51, %v579_v52 }
 0x118   : >>> { %v1612_v14 = vpop.eup %1611 }
 0x119   : >>> { %v529_v15 = vmul.f32 %v1612_v14, %v527_v13  ;;  %vm534_vm9 = vweird.f32 %v1612_v14 }
 0x11a   : >>> { %vm535_vm10 = vmor %vm533_vm8, %vm534_vm9  ;;  %vm616_vm8 = vcmp.eq.s32.totalorder %v614_v6, %v611_v5  ;;  %v626_v5 = vmov %v1769_v5  ;;  %v629_v6 = vmov %v1771_v6 }
 0x11b   : >>> { %v530_v17 = vsub.f32 1.0, %v529_v15  ;;  %vm631_vm9 = vcmp.eq.s32.totalorder %v629_v6, %v626_v5  ;;  %v697_v5 = vmov %v1769_v5 }
 0x11c   : >>> { %v738_v5 = vmov %v1769_v5 }
 0x11d   : >>> { %v531_v21 = vmul.f32 %v1612_v14, %v530_v17  ;;  %v724_v5 = vmov %v1769_v5 }
 0x11f   : >>> { %v532_v24 = vadd.f32 %v1612_v14, %v531_v21 }
 0x121   : >>> { %v536_v25 = vsel %vm535_vm10, %v1612_v14, %v532_v24  ;;  %v871_v24 = vld [vmem:[%s1858_s23] sm:$0xff]  ;;  %vm821_vm10 = vcmp.eq.s32.totalorder %v1771_v6, 0 }
 0x122   : >>> { %v541_v26 = vsel %vm538_vm11, %v540_v22, %v536_v25  ;;  %vm833_vm11 = vcmp.eq.s32.totalorder %v1771_v6, 7  ;;  %v700_v6 = vmov %v1771_v6 }
 0x123   : >>> { %v542_v27 = vmul.f32 %v541_v26, %v526_v23  ;;  %v741_v6 = vmov %v1771_v6 }
 0x124   : >>> { %v727_v6 = vmov %v1771_v6 }
 0x125   : >>> { %v544_v28 = vmul.f32 %v542_v27, %v542_v27  ;;  %vm543_vm14 = vcmp.ge.f32.partialorder %v542_v27, 0.0 }
 0x127   : >>> { %v545_v29 = vadd.f32 1.0, %v544_v28 }
 0x129   : >>> { %1613 = vrsqrt.f32 %v545_v29  ;;  %vm553_vm12 = vcmp.eq.f32.partialorder %v545_v29, inf  ;;  %v556_v36 = vand.u32 2147483648, %v545_v29  ;;  %vm555_vm13 = vcmp.eq.f32.partialorder %v545_v29, 0.0 }
 0x12f   : >>> { %v1614_v30 = vpop.eup %1613 }
 0x130   : >>> { %v547_v31 = vmul.f32 %v1614_v30, %v545_v29 }
 0x132   : >>> { %v548_v32 = vmul.f32 %v1614_v30, %v547_v31 }
 0x134   : >>> { %v549_v33 = vmul.f32 0.5, %v548_v32 }
 0x136   : >>> { %v550_v34 = vsub.f32 1.5, %v549_v33 }
 0x138   : >>> { %v551_v35 = vmul.f32 %v1614_v30, %v550_v34 }
 0x13a   : >>> { %v552_v37 = vmul.f32 %v551_v35, %v545_v29 }
 0x13c   : >>> { %v554_v38 = vsel %vm553_vm12, %v545_v29, %v552_v37  ;;  %v872_v29 = vld [vmem:[%s1863_s24] sm:$0xff]  ;;  %vm705_vm12 = vcmp.eq.s32.totalorder %v700_v6, %v697_v5  ;;  %v711_v5 = vmov %v1769_v5  ;;  %v714_v6 = vmov %v1771_v6 }
 0x13d   : >>> { %v557_v39 = vsel %vm555_vm13, %v556_v36, %v554_v38  ;;  %vm746_vm13 = vcmp.eq.s32.totalorder %v741_v6, %v738_v5 }
 0x13e   : >>> { %v558_v40 = vxor.u32 2147483648, %v557_v39 }
 0x140   : >>> { %v559_v41 = vsel %vm543_vm14, %v557_v39, %v558_v40  ;;  %vm731_vm14 = vcmp.eq.s32.totalorder %v727_v6, %v724_v5 }
 0x141   : >>> { %v560_v42 = vadd.f32 %v559_v41, %v542_v27 }
 0x143   : >>> { %1615 = vrcp.f32 %v560_v42  ;;  %v572_v48 = vand.u32 2147483648, %v560_v42  ;;  %vm566_vm15 = vweird.f32 %v560_v42  ;;  %v570_v50 = vand.u32 2147483647, %v560_v42 }
 0x145   : >>> { %v573_v54 = vor.u32 1.1754944e-38, %v572_v48  ;;  %vm571_vm3 = vcmp.eq.f32.partialorder %v570_v50, 8.507059e+37 }
 0x149   : >>> { %v1616_v45 = vpop.eup %1615 }
 0x14a   : >>> { %v562_v47 = vmul.f32 %v1616_v45, %v560_v42  ;;  %vm567_vm0 = vweird.f32 %v1616_v45 }
 0x14b   : >>> { %vm568_vm1 = vmor %vm566_vm15, %vm567_vm0  ;;  %vm718_vm15 = vcmp.eq.s32.totalorder %v714_v6, %v711_v5  ;;  %vm777_vm0 = vcmp.eq.s32.totalorder %v1769_v5, 7  ;;  %v361_v6 = vmov (%p454_p9), %v1771_v6 }
 0x14c   : >>> { %v563_v49 = vsub.f32 1.0, %v562_v47 }
 0x14e   : >>> { %v564_v53 = vmul.f32 %v1616_v45, %v563_v49 }
 0x150   : >>> { %v565_v55 = vadd.f32 %v1616_v45, %v564_v53 }
 0x152   : >>> { %v569_v56 = vsel %vm568_vm1, %v1616_v45, %v565_v55  ;;  %vm760_vm1 = vcmp.eq.s32.totalorder %v1769_v5, 0 }
 0x153   : >>> { %v574_v57 = vsel %vm571_vm3, %v573_v54, %v569_v56  ;;  %vm764_vm3 = vcmp.eq.s32.totalorder %v1769_v5, 1  ;;  %v358_v5 = vmov (%p454_p9), %v1769_v5 }
 0x154   : >>> { %v581_v58 = vsel %vm580_vm4, 0.0, %v574_v57  ;;  %vm373_vm4 = vcmp.eq.s32.totalorder (%p454_p9), %v361_v6, %v358_v5  ;;  %v377_v5 = vmov (%p454_p9), %v1769_v5  ;;  %v380_v6 = vmov (%p454_p9), %v1771_v6 }
 0x155   : >>> { %v582_v59 = vmul.f32 %v581_v58, %v581_v58  ;;  %v595_v60 = vmul.f32 %v581_v58, %v1834_v12  ;;  %v394_v5 = vmov (%p454_p9), %v1769_v5  ;;  %v397_v6 = vmov (%p454_p9), %v1771_v6 }
 0x156   : >> { %v411_v5 = vmov (%p454_p9), %v1769_v5  ;;  %v414_v6 = vmov (%p454_p9), %v1771_v6 }
 0x157   : >>> { %v583_v61 = vadd.f32 1.0, %v582_v59  ;;  %v596_v62 = vsub.f32 %v521_v19, %v595_v60  ;;  %v598_v63 = vadd.f32 %v595_v60, %v525_v20  ;;  %v869_v19 = vld [vmem:[%s1850_s30] sm:$0xff] }
 0x158   : >>> { %v870_v20 = vld [vmem:[%s1853_s15] sm:$0xff] }
 0x159   : >>> { %1617 = vrsqrt.f32 %v583_v61  ;;  %600 = vst [vmem:[%s599_s27] sm:$0xff] %v596_v62  ;;  %vm590_vm5 = vweird.f32 %v583_v61  ;;  %s637_s27 = smov [#allocation21] }
 0x15a   : >>> { %602 = vst [vmem:[%s601_s28] sm:$0xff] %v598_v63  ;;  %s1843_s28 = smov [#allocation10] }
 0x15b   : >>> { %v645_v22 = vld [vmem:[%s1843_s28] sm:$0xff] }
 0x15f   : >>> { %v1618_v0 = vpop.eup %1617 }
 0x160   : >>> { %v585_v1 = vmul.f32 %v1618_v0, %v583_v61  ;;  %vm591_vm6 = vweird.f32 %v1618_v0 }
 0x161   : >>> { %vm592_vm7 = vmor %vm590_vm5, %vm591_vm6  ;;  %vm426_vm5 = vcmp.eq.s32.totalorder (%p454_p9), %v414_v6, %v411_v5 }
 0x162   : >>> { %v586_v2 = vmul.f32 %v1618_v0, %v585_v1 }
 0x164   : >>> { %v587_v3 = vmul.f32 0.5, %v586_v2 }
 0x166   : >>> { %v588_v4 = vsub.f32 1.5, %v587_v3 }
 0x168   : >>> { %v589_v7 = vmul.f32 %v1618_v0, %v588_v4 }
 0x16a   : >>> { %v593_v8 = vsel %vm592_vm7, %v1618_v0, %v589_v7 }
 0x16b   : >>> { %604 = vst [vmem:[%s603_s11] sm:$0xff] %v593_v8  ;;  %v594_v9 = vmul.f32 %v593_v8, %v581_v58  ;;  %s1845_s11 = smov [#allocation11] }
 0x16c   : >>> { %v646_v16 = vld [vmem:[%s1845_s11] sm:$0xff] }
 0x16d   : >>> { %606 = vst [vmem:[%s605_s21] sm:$0xff] %v594_v9  ;;  %s1847_s21 = smov [#allocation12] }
 0x16e   : >>> { %v647_v17 = vld [vmem:[%s1847_s21] sm:$0xff] }
 0x172   : >>> { %v608_v10 = vld [vmem:[%s607_s22] ss:$0 sm:$0xff]  ;;  %s861_s22 = smov [#allocation21] }
 0x173   : >>> { %v617_v11 = vsel %vm616_vm8, %v608_v10, 0.0 }
 0x174   : >>> { %618 = vadd.xlane.f32.xlu0 %v617_v11  ;;  %v623_v12 = vld [vmem:[%s622_s29] ss:$0 sm:$0xff]  ;;  %s1855_s29 = smov [#allocation13] }
 0x175   : >>> { %v632_v13 = vsel %vm631_vm9, %v623_v12, 0.0  ;;  %v648_v23 = vld [vmem:[%s1855_s29] sm:$0xff] }
 0x17c   : >>> { %633 = vadd.xlane.f32.xlu0 %v632_v13 }
 0x1e7   : >>> { %v619_v14 = vpop.xlane.xlu0 %618 }
 0x1e8   : >>> { %621 = vst [vmem:[%s620_s14] sm:$0xff] %v619_v14  ;;  %s639_s14 = smov [#allocation22] }
 0x1ef   : >>> { %v634_v15 = vpop.xlane.xlu0 %633  ;;  %v638_v18 = vld [vmem:[%s637_s27] sm:$0xff]  ;;  %s665_s27 = smov [#allocation19] }
 0x1f0   : >>> { %636 = vst [vmem:[%s635_s20] sm:$0xff] %v634_v15  ;;  %s863_s20 = smov [#allocation22]  ;;  %v862_v21 = vld [vmem:[%s861_s22] sm:$0xff]  ;;  %v652_v25 = vmul.f32 %v646_v16, %v638_v18  ;;  %v656_v26 = vmul.f32 %v647_v17, %v638_v18  ;;  %v649_v46 = vmul.f32 %v645_v22, %v638_v18  ;;  %v659_v48 = vmul.f32 %v648_v23, %v638_v18  ;;  %s667_s22 = smov [#allocation20] }
 0x1f1   : >>> { %v873_v30 = vmul.f32 %v869_v19, %v862_v21  ;;  %v876_v31 = vmul.f32 %v870_v20, %v862_v21  ;;  %v880_v38 = vmul.f32 %v871_v24, %v862_v21  ;;  %v883_v42 = vmul.f32 %v872_v29, %v862_v21  ;;  %v666_v52 = vld [vmem:[%s665_s27] ss:$0 sm:$0xff]  ;;  %s693_s27 = smov [#allocation10] }
 0x1f2   : >>> { %v668_v53 = vld [vmem:[%s667_s22] ss:$0 sm:$0xff]  ;;  %s734_s22 = smov [#allocation13] }
 0x1f7   : >>> { %v640_v27 = vld [vmem:[%s639_s14] sm:$0xff]  ;;  %s1877_s14 = smov [#allocation12] }
 0x1f8   : >>> { %v864_v28 = vld [vmem:[%s863_s20] sm:$0xff]  ;;  %v653_v32 = vmul.f32 %v648_v23, %v640_v27  ;;  %v655_v33 = vmul.f32 %v645_v22, %v640_v27  ;;  %v650_v39 = vmul.f32 %v647_v17, %v640_v27  ;;  %v658_v43 = vmul.f32 %v646_v16, %v640_v27  ;;  %s735_s20 = smov [#allocation18] }
 0x1f9   : >>> { %v874_v34 = vmul.f32 %v871_v24, %v864_v28  ;;  %v877_v35 = vmul.f32 %v872_v29, %v864_v28  ;;  %v879_v36 = vmul.f32 %v869_v19, %v864_v28  ;;  %v882_v37 = vmul.f32 %v870_v20, %v864_v28  ;;  %v742_v23 = vld [vmem:[%s735_s20] ss:$0 sm:$0xff]  ;;  %s1660_s20 = smov 1  }
 0x1fa   : >>> { %v654_v40 = vsub.f32 %v652_v25, %v653_v32  ;;  %v657_v41 = vadd.f32 %v656_v26, %v655_v33  ;;  %v651_v50 = vsub.f32 %v649_v46, %v650_v39  ;;  %v660_v51 = vadd.f32 %v659_v48, %v658_v43 }
 0x1fb   : >>> { %v875_v44 = vsub.f32 %v873_v30, %v874_v34  ;;  %v878_v45 = vsub.f32 %v876_v31, %v877_v35  ;;  %v881_v47 = vadd.f32 %v880_v38, %v879_v36  ;;  %v884_v49 = vadd.f32 %v883_v42, %v882_v37 }
 0x1fc   : >>> { %662 = vst [vmem:[%s1845_s11] sm:$0xff] %v654_v40  ;;  %s1879_s11 = smov [#allocation11] }
 0x1fd   : >>> { %663 = vst [vmem:[%s1847_s21] sm:$0xff] %v657_v41  ;;  %s1891_s21 = smov [#allocation10] }
 0x1fe   : >>> { %885 = vst [vmem:[%s1850_s30] sm:$0xff] %v875_v44  ;;  %s889_s30 = smov %s1776_s30 }
 0x1ff   : >>> { %886 = vst [vmem:[%s1853_s15] sm:$0xff] %v878_v45  ;;  %s1885_s15 = smov %s1781_s15 }
 0x200   : >>> { %887 = vst [vmem:[%s1858_s23] sm:$0xff] %v881_v47  ;;  %s890_s23 = smov %s1789_s23 }
 0x201   : >>> { %888 = vst [vmem:[%s1863_s24] sm:$0xff] %v884_v49  ;;  %s1895_s24 = smov %s1793_s24 }
 0x202   : >>> { %661 = vst [vmem:[%s1843_s28] sm:$0xff] %v651_v50  ;;  %s672_s28 = smov [#allocation13] }
 0x203   : >>> { %664 = vst [vmem:[%s1855_s29] sm:$0xff] %v660_v51  ;;  %v674_v55 = vld [vmem:[%s1879_s11] sm:$0xff]  ;;  %s694_s29 = smov [#allocation17] }
 0x204   : >>> { %v675_v54 = vld [vmem:[%s1877_s14] sm:$0xff]  ;;  %v678_v4 = vmul.f32 %v674_v55, %v668_v53  ;;  %v681_v12 = vmul.f32 %v674_v55, %v666_v52 }
 0x205   : >>> { %v891_v56 = vld [vmem:[%s889_s30] ss:$0 sm:$0xff]  ;;  %v1539_v58 = vld [vmem:[%s889_s30 + $0x7] ss:$0 sm:$0xff]  ;;  %v686_v9 = vmul.f32 %v675_v54, %v668_v53  ;;  %v683_v10 = vmul.f32 %v675_v54, %v666_v52 }
 0x206   : >>> { %v1538_v57 = vld [vmem:[%s889_s30 - $0x1] sm:$0xfe]  ;;  %v1543_v62 = vld [vmem:[%s1885_s15 + $0x7] ss:$0 sm:$0xff] }
 0x207   : >>> { %v898_v59 = vsel %vm821_vm10, %v891_v56, %v1538_v57  ;;  %v915_v60 = vld [vmem:[%s1885_s15] ss:$0 sm:$0xff]  ;;  %v1541_v0 = vld [vmem:[%s890_s23 + $0x1] sm:$0x7f] }
 0x208   : >>> { %v1542_v61 = vld [vmem:[%s1885_s15 - $0x1] sm:$0xfe]  ;;  %901 = vst [vmem:[%s889_s30] sm:$0xff] %v898_v59  ;;  %v910_v2 = vsel %vm833_vm11, %v1539_v58, %v1541_v0 }
 0x209   : >>> { %v902_v63 = vld [vmem:[%s890_s23] ss:$0 sm:$0xff]  ;;  %v922_v1 = vsel %vm821_vm10, %v915_v60, %v1542_v61  ;;  %v1545_v3 = vld [vmem:[%s1895_s24 + $0x1] sm:$0x7f] }
 0x20a   : >>> { %1540 = vst [vmem:[%s889_s30 + $0x1] sm:$0x1] %v902_v63  ;;  %v926_v7 = vld [vmem:[%s1895_s24] ss:$0 sm:$0xff]  ;;  %v934_v8 = vsel %vm833_vm11, %v1543_v62, %v1545_v3 }
 0x20b   : >>> { %912 = vst [vmem:[%s890_s23] sm:$0xff] %v910_v2  ;;  %v673_v11 = vld [vmem:[%s1891_s21] sm:$0xff] }
 0x20c   : >>> { %925 = vst [vmem:[%s1885_s15] sm:$0xff] %v922_v1  ;;  %v676_v13 = vld [vmem:[%s672_s28] sm:$0xff]  ;;  %v677_v14 = vmul.f32 %v673_v11, %v666_v52  ;;  %v680_v15 = vmul.f32 %v673_v11, %v668_v53 }
 0x20d   : >>> { %1544 = vst [vmem:[%s1885_s15 + $0x1] sm:$0x1] %v926_v7  ;;  %v684_v16 = vmul.f32 %v676_v13, %v668_v53  ;;  %v687_v17 = vmul.f32 %v676_v13, %v666_v52  ;;  %v701_v22 = vld [vmem:[%s694_s29] ss:$0 sm:$0xff]  ;;  %s1929_s29 = smov [#allocation12] }
 0x20e   : >>> { %936 = vst [vmem:[%s1895_s24] sm:$0xff] %v934_v8  ;;  %v679_v18 = vsub.f32 %v677_v14, %v678_v4  ;;  %v682_v21 = vadd.f32 %v681_v12, %v680_v15 }
 0x20f   : >>> { %v688_v19 = vadd.f32 %v687_v17, %v686_v9  ;;  %v685_v20 = vsub.f32 %v683_v10, %v684_v16 }
 0x210   : >>> { %689 = vst [vmem:[%s1891_s21] sm:$0xff] %v679_v18  ;;  %s708_s21 = smov [#allocation11] }
 0x211   : >>> { %692 = vst [vmem:[%s672_s28] sm:$0xff] %v688_v19  ;;  %s1927_s28 = smov [#allocation13] }
 0x212   : >>> { %691 = vst [vmem:[%s1877_s14] sm:$0xff] %v685_v20  ;;  %s721_s14 = smov [#allocation12] }
 0x213   : >>> { %690 = vst [vmem:[%s1879_s11] sm:$0xff] %v682_v21  ;;  %s1925_s11 = smov [#allocation10] }
 0x217   : >>> { %v702_v24 = vld [vmem:[%s693_s27] sm:$0xff] }
 0x218   : >>> { %v743_v25 = vld [vmem:[%s734_s22] sm:$0xff]  ;;  %v706_v26 = vsel %vm705_vm12, %v701_v22, %v702_v24 }
 0x219   : >>> { %v747_v27 = vsel %vm746_vm13, %v742_v23, %v743_v25  ;;  %v728_v28 = vld [vmem:[%s721_s14] sm:$0xff]  ;;  %707 = vst [vmem:[%s693_s27] sm:$0xff] %v706_v26  ;;  %s750_s27 = smov [#allocation11] }
 0x21a   : >>> { %748 = vst [vmem:[%s734_s22] sm:$0xff] %v747_v27  ;;  %v732_v29 = vsel %vm731_vm14, 0.0, %v728_v28  ;;  %v715_v30 = vld [vmem:[%s708_s21] sm:$0xff]  ;;  %s1661_s22 = smov 127  }
 0x21b   : >>> { %733 = vst [vmem:[%s721_s14] sm:$0xff] %v732_v29  ;;  %v719_v31 = vsel %vm718_vm15, 0.0, %v715_v30  ;;  %s1937_s14 = smov [#allocation11] }
 0x21c   : >>> { %720 = vst [vmem:[%s708_s21] sm:$0xff] %v719_v31  ;;  %s814_s21 = smov [#allocation12] }
 0x220   : >>> { %v755_v32 = vld [vmem:[%s1925_s11] sm:$0xff] }
 0x221   : >>> { %v783_v33 = vld [vmem:[%s1927_s28] sm:$0xff]  ;;  %756 = vrot.lane.b32.xlu1 %v755_v32, %s1660_s20 }
 0x222   : >>> { %784 = vrot.lane.b32.xlu0 %v783_v33, %s1660_s20  ;;  %v787_v34 = vld [vmem:[%s1929_s29] sm:$0xff] }
 0x223   : >>> { %788 = vrot.lane.b32.xlu2 %v787_v34, %s1660_s20  ;;  %v772_v35 = vld [vmem:[%s750_s27] sm:$0xff] }
 0x229   : >>> { %752 = vrot.lane.b32.xlu1 %v772_v35, %s1660_s20  ;;  %s813_s20 = smov [#allocation10] }
 0x22b   : >>> { %773 = vrot.lane.b32.xlu2 %v772_v35, %s1661_s22 }
 0x231   : >>> { %805 = vrot.lane.b32.xlu1 %v783_v33, %s1661_s22  ;;  %s398_s22 = smov (%p454_p9), [#allocation12] }
 0x27d   : >>> { %v789_v36 = vpop.permute.xlu2 %788 }
 0x27e   : >>> { %v793_v44 = vsel %vm760_vm1, %v787_v34, %v789_v36 }
 0x285   : >>> { %v774_v37 = vpop.permute.xlu2 %773 }
 0x286   : >>> { %v778_v38 = vsel %vm777_vm0, %v755_v32, %v774_v37 }
 0x287   : >>> { %780 = vst [vmem:[%s750_s27] sm:$0xff] %v778_v38  ;;  %s381_s27 = smov (%p454_p9), [#allocation11] }
 0x28e   : >>> { %v839_v39 = vld [vmem:[%s1937_s14] ss:$0 sm:$0xff]  ;;  %v1535_v41 = vld [vmem:[%s1937_s14 + $0x7] ss:$0 sm:$0xff] }
 0x28f   : >>> { %v1534_v40 = vld [vmem:[%s1937_s14 - $0x1] sm:$0xfe] }
 0x290   : >>> { %v846_v42 = vsel %vm821_vm10, %v839_v39, %v1534_v40 }
 0x291   : >>> { %849 = vst [vmem:[%s1937_s14] sm:$0xff] %v846_v42 }
 0x293   : >>> { %v757_v43 = vpop.permute.xlu1 %756 }
 0x294   : >>> { %v785_v45 = vpop.permute.xlu0 %784  ;;  %v761_v48 = vsel %vm760_vm1, %v755_v32, %v757_v43 }
 0x295   : >>> { %v797_v46 = vsel %vm764_vm3, %v785_v45, %v793_v44 }
 0x296   : >>> { %v803_v47 = vsel %vm1399_vm2, %v797_v46, 0.0 }
 0x297   : >>> { %811 = vst [vmem:[%s1929_s29] sm:$0xff] %v803_v47  ;;  %s362_s29 = smov (%p454_p9), [#allocation10] }
 0x29b   : >>> { %v753_v49 = vpop.permute.xlu1 %752 }
 0x29c   : >>> { %v765_v50 = vsel %vm764_vm3, %v753_v49, %v761_v48 }
 0x29d   : >>> { %v771_v51 = vsel %vm1399_vm2, %v765_v50, 0.0 }
 0x29e   : >>> { %779 = vst [vmem:[%s1925_s11] sm:$0xff] %v771_v51  ;;  %v1533_v53 = vld [vmem:[%s814_s21 + $0x1] sm:$0x7f]  ;;  %v826_v60 = vld [vmem:[%s814_s21] ss:$0 sm:$0xff]  ;;  %s838_s11 = smov [#allocation13] }
 0x2a3   : >>> { %v806_v52 = vpop.permute.xlu1 %805 }
 0x2a4   : >>> { %v810_v54 = vsel %vm777_vm0, %v787_v34, %v806_v52 }
 0x2a5   : >>> { %v815_v55 = vld [vmem:[%s813_s20] ss:$0 sm:$0xff]  ;;  %v1531_v57 = vld [vmem:[%s813_s20 + $0x7] ss:$0 sm:$0xff]  ;;  %812 = vst [vmem:[%s1927_s28] sm:$0xff] %v810_v54  ;;  %s937_s28 = sadd.s32 (%p454_p9), 1, %s1653_s16  }
 0x2a6   : >>> { %v1530_v56 = vld [vmem:[%s813_s20 - $0x1] sm:$0xfe]  ;;  %v834_v59 = vsel %vm833_vm11, %v1531_v57, %v1533_v53  ;;  %p450_p10 = scmp.ge.s32.totalorder (%p454_p9), %s937_s28, 15  ;;  %s2054_s16 = smov (%p454_p9), %s937_s28 }
 0x2a7   : >>> { %v822_v58 = vsel %vm821_vm10, %v815_v55, %v1530_v56  ;;  %836 = vst [vmem:[%s814_s21] sm:$0xff] %v834_v59 }
 0x2a8   : >>> { %825 = vst [vmem:[%s813_s20] sm:$0xff] %v822_v58 }
 0x2a9   : >>> { %1532 = vst [vmem:[%s813_s20 + $0x1] sm:$0x1] %v826_v60 }
 0x2ac   : >>> { %v850_v61 = vld [vmem:[%s838_s11] ss:$0 sm:$0xff]  ;;  %v1537_v62 = vld [vmem:[%s838_s11 + $0x1] sm:$0x7f] }
 0x2ad   : >>> { %1536 = vst [vmem:[%s1937_s14 + $0x1] sm:$0x1] %v850_v61  ;;  %v858_v63 = vsel %vm833_vm11, %v1535_v41, %v1537_v62  ;;  %456 = sbr.rel (!%p454_p9) target bundleno = 248 (0xf8), region = 502  ;;  %s415_s14 = smov (%p454_p9), [#allocation13] }
 0x2ae   : >>> { %860 = vst [vmem:[%s838_s11] sm:$0xff] %v858_v63  ;;  %v404_v4 = vld [vmem:[%s398_s22] sm:$0xff] (%p454_p9) }
 0x2af   : >> { %v405_v10 = vsel (%p454_p9), %vm1399_vm2, %v404_v4, 0.0 }
 0x2b0   : >> { %v368_v0 = vld [vmem:[%s362_s29] sm:$0xff] (%p454_p9)  ;;  %v406_v12 = vmul.f32 (%p454_p9), %v405_v10, %v405_v10 }
 0x2b1   : >> { %v369_v2 = vsel (%p454_p9), %vm1399_vm2, %v368_v0, 0.0 }
 0x2b2   : >> { %v370_v8 = vmul.f32 %v369_v2, %v369_v2 }
 0x2b4   : >> { %v387_v1 = vld [vmem:[%s381_s27] sm:$0xff]  ;;  %v374_v15 = vsel %vm373_vm4, 0.0, %v370_v8 }
 0x2b5   : >> { %v388_v3 = vsel %vm1399_vm2, %v387_v1, 0.0  ;;  %v421_v7 = vld [vmem:[%s415_s14] sm:$0xff] }
 0x2b6   : >> { %v389_v9 = vmul.f32 %v388_v3, %v388_v3  ;;  %v422_v11 = vsel %vm1399_vm2, %v421_v7, 0.0 }
 0x2b7   : >> { %v423_v14 = vmul.f32 %v422_v11, %v422_v11 }
 0x2b8   : >> { %v391_v13 = vadd.f32 %v389_v9, %v370_v8  ;;  %v390_v17 = vadd.f32 %v389_v9, %v374_v15 }
 0x2b9   : >> { %v427_v20 = vsel %vm426_vm5, 0.0, %v423_v14 }
 0x2ba   : >> { %v408_v16 = vadd.f32 %v406_v12, %v391_v13  ;;  %v407_v19 = vadd.f32 %v406_v12, %v390_v17 }
 0x2bc   : >> { %v429_v18 = vadd.f32 %v423_v14, %v408_v16  ;;  %v428_v21 = vadd.f32 %v427_v20, %v407_v19 }
 0x2be   : >> { %430 = vadd.xlane.f32.xlu0 %v429_v18 }
 0x2c6   : >> { %438 = vadd.xlane.f32.xlu0 %v428_v21 }
 0x331   : >> { %v431_v22 = vpop.xlane.xlu0 %430 }
 0x332   : >> { %v432_v23 = vrot.slane %v431_v22, 4 }
 0x334   : >> { %v433_v24 = vadd.f32 %v432_v23, %v431_v22 }
 0x336   : >> { %v434_v25 = vrot.slane %v433_v24, 2 }
 0x338   : >> { %v435_v29 = vadd.f32 %v434_v25, %v433_v24 }
 0x339   : >> { %v439_v26 = vpop.xlane.xlu0 %438 }
 0x33a   : >> { %v440_v27 = vrot.slane %v439_v26, 4  ;;  %v436_v32 = vrot.slane %v435_v29, 1 }
 0x33c   : >> { %v441_v28 = vadd.f32 %v440_v27, %v439_v26  ;;  %v437_v35 = vadd.f32 %v436_v32, %v435_v29 }
 0x33e   : >> { %v442_v30 = vrot.slane %v441_v28, 2 }
 0x340   : >> { %v443_v31 = vadd.f32 %v442_v30, %v441_v28 }
 0x342   : >> { %v444_v33 = vrot.slane %v443_v31, 1 }
 0x344   : >> { %v445_v34 = vadd.f32 %v444_v33, %v443_v31 }
 0x346   : >> { %1564 = vpush %v445_v34 }
 0x347   : >> { %1566 = vpush %v437_v35 }
 0x377   : >> { %s1565_s17 = spop %1564 }
 0x378   : >> { %s1567_s21 = spop %1566 }
 0x379   : >> { %s448_s20 = smul.f32 1e-10, %s1567_s21 }
 0x37b   : >> { %p449_p11 = scmp.le.f32.partialorder %s1565_s17, %s448_s20 }
 0x37d   : >> { %p451_p12 = por %p450_p10, %p449_p11 }
 0x37f   : > { %939 = sbr.rel (!%p451_p12) target bundleno = 247 (0xf7), region = 513 }
 0x384 PF: > { %s944_s11 = smov [#allocation10]  ;;  %v948_v5 = vmov %v1769_v5  ;;  %v951_v6 = vmov %v1771_v6  ;;  %s964_s16 = smov [#allocation13] }
 0x385   : > { %v968_v5 = vmov %v1769_v5  ;;  %v971_v6 = vmov %v1771_v6  ;;  %v952_v36 = vld [vmem:[%s944_s11] sm:$0xff]  ;;  %vm955_vm6 = vcmp.eq.s32.totalorder %v951_v6, %v948_v5  ;;  %s940_s28 = sand.u32 7, %s1728_s12   ;;  %s1011_s22 = sshrl.u32 (%p1742_p3), %s1728_s12, 3 }
 0x386   : > { %vm975_vm7 = vcmp.eq.s32.totalorder %v971_v6, %v968_v5  ;;  %v956_v37 = vsel %vm955_vm6, %v952_v36, 0.0  ;;  %v972_v39 = vld [vmem:[%s964_s16] sm:$0xff]  ;;  %s941_s29 = scalar_lea.vmem %s287_s25, %s940_s28 [#allocation4]  ;;  %s943_s27 = scalar_lea.vmem %s293_s26, %s940_s28 [#allocation5] }
 0x387   : > { %v957_v38 = vrot.slane %v956_v37, 4  ;;  %v976_v40 = vsel %vm975_vm7, %v972_v39, 0.0  ;;  %s945_s29 = smov %s941_s29  ;;  %s965_s27 = smov %s943_s27 }
 0x388   : > { %v977_v42 = vrot.slane %v976_v40, 4  ;;  %s1552_s14 = sshll.u32 (%p1742_p3), %s1011_s22, 3 }
 0x389   : > { %v958_v41 = vadd.f32 %v957_v38, %v956_v37  ;;  %s1013_s20 = scalar_lea.vmem (%p1742_p3), %s2046_s4, %s1552_s14 }
 0x38a   : > { %v978_v44 = vadd.f32 %v977_v42, %v976_v40 }
 0x38b   : > { %v959_v43 = vrot.slane %v958_v41, 2 }
 0x38c   : > { %v979_v46 = vrot.slane %v978_v44, 2 }
 0x38d   : > { %v960_v45 = vadd.f32 %v959_v43, %v958_v41 }
 0x38e   : > { %v980_v48 = vadd.f32 %v979_v46, %v978_v44 }
 0x38f   : > { %v961_v47 = vrot.slane %v960_v45, 1 }
 0x390   : > { %v981_v6 = vrot.slane %v980_v48, 1  ;;  %1010 = sbr.rel (!%p1742_p3) target bundleno = 924 (0x39c), region = 174 }
 0x391   : > { %v962_v5 = vadd.f32 %v961_v47, %v960_v45 }
 0x392   : > { %v982_v49 = vadd.f32 %v981_v6, %v980_v48 }
 0x393   : > { %963 = vst [vmem:[%s945_s29] sm:$0x1] %v962_v5 }
 0x394   : > { %983 = vst [vmem:[%s965_s27] sm:$0x1] %v982_v49 }
 0x39a   : > { %v1042_v50 = vld [vmem:[%s287_s25] sm:$0xff] }
 0x39b   : > { %1043 = vst [vmem:[%s1013_s20] sm:$0xff] %v1042_v50 }
 0x39c PF: > { %1049 = sbr.rel (!%p1742_p3) target bundleno = 932 (0x3a4), region = 212  ;;  %s1050_s11 = sshrl.u32 (%p1742_p3), %s1728_s12, 3 }
 0x39d   : > { %s1553_s16 = sshll.u32 (%p1742_p3), %s1050_s11, 3 }
 0x39e   : > { %s1052_s25 = scalar_lea.vmem (%p1742_p3), %s2047_s5, %s1553_s16 }
 0x3a2   : > { %v1081_v51 = vld [vmem:[%s293_s26] sm:$0xff] }
 0x3a3   : > { %1082 = vst [vmem:[%s1052_s25] sm:$0xff] %v1081_v51 }
 0x3a4 PF: > { %s1554_s27 = sshll.u32 %s1728_s12, 3  ;;  %v1116_v52 = vld [vmem:[%s1776_s30] sm:$0xff]  ;;  %v1151_v53 = vld [vmem:[%s1781_s15] sm:$0xff] }
 0x3a5   : > { %s1087_s18 = scalar_lea.vmem %s2048_s6, %s1554_s27  ;;  %s1122_s17 = scalar_lea.vmem %s2049_s7, %s1554_s27  ;;  %v1186_v54 = vld [vmem:[%s1789_s23] sm:$0xff]  ;;  %v1221_v55 = vld [vmem:[%s1793_s24] sm:$0xff] }
 0x3a6   : > { %1117 = vst [vmem:[%s1087_s18] sm:$0xff] %v1116_v52  ;;  %s1157_s11 = scalar_lea.vmem %s2050_s8, %s1554_s27  ;;  %s1192_s12 = scalar_lea.vmem %s2051_s9, %s1554_s27 }
 0x3a7   : > { %1152 = vst [vmem:[%s1122_s17] sm:$0xff] %v1151_v53 }
 0x3a8   : > { %1187 = vst [vmem:[%s1157_s11] sm:$0xff] %v1186_v54 }
 0x3a9   : > { %1222 = vst [vmem:[%s1192_s12] sm:$0xff] %v1221_v55 }
 0x3aa PF: > { %s2055_s15 = sld [smem:[#allocation23_spill]]  ;;  %p13_p13 = scmp.ge.s32.totalorder %s1731_s13, 10  }
 0x3ab   : > { %s2056_s30 = smov %s1645_s10  ;;  %s2058_s11 = smov %s1731_s13 }
 0x3ac   :  { %15 = sbr.rel (!%p13_p13) target bundleno = 2 (0x2), region = 524 }
 0x3b0   : > { %s2057_s10 = smov %s2055_s15 }

// kernel: riemannian_batch_norm_forward.4
= control target key start
LH: loop header
LB: loop body
LE: loop exit
PB: predicated region body
PF: predicated region fallthrough
CT: control target
= control target key end

     0   :  { %vm33_vm0 = vcmask 130048   ;;  %v100_v4 = vlaneseq  ;;  %v504_v22 = vmov 1.0   ;;  %s773_s0 = inlined_call_operand.vmem [shape: f32[16,16], index: 0, kind: input, shape index: {}]   ;;  %s774_s1 = inlined_call_operand.vmem [shape: f32[1,16], index: 1, kind: input, shape index: {}]   ;;  %s775_s2 = inlined_call_operand.vmem [shape: f32[16,128], index: 2, kind: input, shape index: {}]   ;;  %s776_s3 = inlined_call_operand.vmem [shape: f32[16,128], index: 3, kind: output, shape index: {}]  }
   0x1   :  { %v15_v0 = vld [vmem:[%s773_s0 + $0x8] sm:$0xff]  ;;  %v16_v1 = vld [vmem:[%s774_s1] sm:$0x1] }
   0x2   :  { %v17_v2 = vmax.f32 %v16_v1, 1e-30  ;;  %454 = vmatpush.xpose.msk.msra.mxu0 %vm33_vm0, %v15_v0  ;;  %v70_v3 = vld [vmem:[%s775_s2 + $0x8] sm:$0xff]  ;;  %v14_v5 = vld [vmem:[%s773_s0] sm:$0xff]  ;;  %v214_v6 = vand.u32 127, %v100_v4  ;;  %v540_v7 = vshrl.u32 %v100_v4, 7 }
   0x3   :  { %91 = vmatpush.msra.mxu1 %v70_v3  ;;  %v69_v28 = vld [vmem:[%s775_s2] sm:$0xff]  ;;  %v505_v1 = vmov 0.0  }
   0x4   :  { %502 = vrsqrt.f32 %v17_v2  ;;  %v542_v8 = vcvt.s32.f32 %v214_v6  ;;  %v102_v11 = vadd.s32 8, %v540_v7  ;;  %vm24_vm1 = vweird.f32 %v17_v2 }
   0x5   :  { %v556_v27 = vcvt.s32.f32 %v540_v7  ;;  %92 = vmatpush.msra.mxu1 %v69_v28  ;;  %v110_v31 = vadd.s32 72, %v540_v7  ;;  %v111_v34 = vadd.s32 80, %v540_v7  ;;  %v112_v39 = vadd.s32 88, %v540_v7 }
   0x6   :  { %455 = vmatpush.xpose.msk.msra.mxu0 %vm33_vm0, %v14_v5  ;;  %v248_v9 = vadd.f32 0.5, %v542_v8  ;;  %v548_v16 = vcvt.s32.f32 %v102_v11  ;;  %v105_v40 = vadd.s32 32, %v540_v7  ;;  %v578_v47 = vadd.s32 96, %v540_v7 }
   0x7   :  { %v126_v32 = vcvt.s32.f32 %v110_v31  ;;  %v127_v36 = vcvt.s32.f32 %v111_v34  ;;  %v128_v44 = vcvt.s32.f32 %v112_v39  ;;  %v106_v53 = vadd.s32 40, %v540_v7 }
   0x8   :  { %v249_v12 = vmul.f32 0.0625, %v248_v9  ;;  %v121_v41 = vcvt.s32.f32 %v105_v40  ;;  %v129_v54 = vcvt.s32.f32 %v578_v47  ;;  %v594_v63 = vadd.s32 104, %v540_v7 }
   0x9   :  { %v142_v33 = vadd.f32 0.5, %v126_v32  ;;  %v143_v38 = vadd.f32 0.5, %v127_v36  ;;  %v144_v51 = vadd.f32 0.5, %v128_v44  ;;  %v122_v56 = vcvt.s32.f32 %v106_v53 }
   0xa   :  { %v503_v10 = vpop.eup %502  ;;  %v546_v14 = vfloor.f32 %v249_v12  ;;  %v137_v45 = vadd.f32 0.5, %v121_v41  ;;  %v145_v62 = vadd.f32 0.5, %v129_v54  ;;  %v107_v9 = vadd.s32 48, %v540_v7 }
   0xb   :  { %v19_v13 = vmul.f32 %v503_v10, %v17_v2  ;;  %vm25_vm2 = vweird.f32 %v503_v10  ;;  %v568_v35 = vmul.f32 0.0625, %v142_v33  ;;  %v575_v43 = vmul.f32 0.0625, %v143_v38 }
   0xc   :  { %v251_v17 = vmul.f32 16.0, %v546_v14  ;;  %vm26_vm3 = vmor %vm24_vm1, %vm25_vm2  ;;  %v580_v48 = vmul.f32 0.0625, %v137_v45  ;;  %v591_v58 = vmul.f32 0.0625, %v144_v51  ;;  %v138_v60 = vadd.f32 0.5, %v122_v56 }
   0xd   :  { %v20_v15 = vmul.f32 %v503_v10, %v19_v13  ;;  %v174_v37 = vfloor.f32 %v568_v35  ;;  %v175_v50 = vfloor.f32 %v575_v43  ;;  %v130_v11 = vcvt.s32.f32 %v594_v63 }
   0xe   :  { %v252_v19 = vsub.f32 %v542_v8, %v251_v17  ;;  %v169_v52 = vfloor.f32 %v580_v48  ;;  %v123_v13 = vcvt.s32.f32 %v107_v9  ;;  %v108_v28 = vadd.s32 56, %v540_v7 }
   0xf   :  { %v21_v18 = vmul.f32 0.5, %v20_v15  ;;  %v190_v42 = vmul.f32 16.0, %v174_v37  ;;  %v191_v57 = vmul.f32 16.0, %v175_v50  ;;  %v133_v31 = vadd.f32 0.5, %v556_v27 }
  0x10   :  { %vm254_vm4 = vcmp.eq.f32.partialorder %v252_v19, %v548_v16  ;;  %vm253_vm5 = vcmp.eq.f32.partialorder %v252_v19, %v556_v27  ;;  %v185_v55 = vmul.f32 16.0, %v169_v52  ;;  %v124_v33 = vcvt.s32.f32 %v108_v28 }
  0x11   :  { %v22_v20 = vsub.f32 1.5, %v21_v18  ;;  %460 = vmatpush.msk.msra.mxu2 %vm254_vm4, %v504_v22  ;;  %v206_v49 = vsub.f32 %v126_v32, %v190_v42  ;;  %v207_v4 = vsub.f32 %v127_v36, %v191_v57  ;;  %v139_v18 = vadd.f32 0.5, %v123_v13 }
  0x12   :  { %v201_v59 = vsub.f32 %v121_v41, %v185_v55  ;;  %v140_v38 = vadd.f32 0.5, %v124_v33  ;;  %v134_v41 = vadd.f32 0.5, %v548_v16  ;;  %v639_v42 = vmul.f32 0.0625, %v133_v31 }
  0x13   :  { %v23_v21 = vmul.f32 %v503_v10, %v22_v20  ;;  %461 = vmatpush.msk.msra.mxu2 %vm253_vm5, %v504_v22  ;;  %vm225_vm6 = vcmp.eq.f32.partialorder %v206_v49, %v542_v8  ;;  %vm226_vm8 = vcmp.eq.f32.partialorder %v207_v4, %v542_v8  ;;  %v146_v20 = vadd.f32 0.5, %v130_v11 }
  0x14   :  { %vm220_vm7 = vcmp.eq.f32.partialorder %v201_v59, %v542_v8  ;;  %v241_v2 = vsel %vm225_vm6, 1.0, %v505_v1  ;;  %v242_v22 = vsel %vm226_vm8, 1.0, %v505_v1  ;;  %v648_v49 = vadd.s32 120, %v540_v7 }
  0x15   :  { %v27_v23 = vsel %vm26_vm3, %v503_v10, %v23_v21  ;;  %v236_v3 = vsel %vm220_vm7, 1.0, %v505_v1  ;;  %v604_v10 = vmul.f32 0.0625, %v145_v62  ;;  %v616_v21 = vmul.f32 0.0625, %v139_v18 }
  0x16   :  { %v29_v24 = vperm.slane %v27_v23, 0  ;;  %v165_v51 = vfloor.f32 %v639_v42  ;;  %v662_v59 = vmul.f32 0.0625, %v134_v41  ;;  %v132_v62 = vcvt.s32.f32 %v648_v49 }
  0x17   :  { %v177_v19 = vfloor.f32 %v604_v10  ;;  %v103_v63 = vadd.s32 16, %v540_v7 }
  0x18   :  { %v31_v25 = vmul.f32 %v29_v24, %v14_v5  ;;  %v32_v26 = vmul.f32 %v29_v24, %v15_v0  ;;  %v597_v0 = vmul.f32 0.0625, %v138_v60  ;;  %v176_v5 = vfloor.f32 %v591_v58 }
  0x19   :  { %v621_v24 = vadd.s32 112, %v540_v7  ;;  %v166_v9 = vfloor.f32 %v662_v59 }
  0x1a   :  { %456 = vmatmul.msk.f32.vlgmr.msra.gmra.mxu0 %vm33_vm0, %v31_v25  ;;  %v170_v6 = vfloor.f32 %v597_v0  ;;  %v192_v15 = vmul.f32 16.0, %v176_v5 }
  0x1b   :  { %v131_v34 = vcvt.s32.f32 %v621_v24 }
  0x1c   :  { %v186_v12 = vmul.f32 16.0, %v170_v6  ;;  %v208_v25 = vsub.f32 %v128_v44, %v192_v15  ;;  %v641_v44 = vmul.f32 0.0625, %v140_v38 }
  0x1e   :  { %v202_v17 = vsub.f32 %v122_v56, %v186_v12  ;;  %vm227_vm10 = vcmp.eq.f32.partialorder %v208_v25, %v542_v8  ;;  %v172_v53 = vfloor.f32 %v641_v44  ;;  %v181_v56 = vmul.f32 16.0, %v165_v51 }
  0x1f   :  { %v243_v45 = vsel %vm227_vm10, 1.0, %v505_v1  ;;  %vm404_vm10 = vcmp.eq.f32.partialorder %v176_v5, %v546_v14 }
  0x20   :  { %vm221_vm9 = vcmp.eq.f32.partialorder %v202_v17, %v542_v8  ;;  %v188_v57 = vmul.f32 16.0, %v172_v53  ;;  %v119_v17 = vcvt.s32.f32 %v103_v63 }
  0x21   :  { %v237_v23 = vsel %vm221_vm9, 1.0, %v505_v1  ;;  %vm405_vm9 = vcmp.eq.f32.partialorder %v177_v19, %v546_v14 }
  0x22   :  { %457 = vmatmul.msk.f32.gmra.mxu0 %vm33_vm0, %v32_v26  ;;  %v171_v26 = vfloor.f32 %v616_v21  ;;  %v204_v4 = vsub.f32 %v124_v33, %v188_v57 }
  0x24   :  { %v187_v32 = vmul.f32 16.0, %v171_v26  ;;  %vm223_vm14 = vcmp.eq.f32.partialorder %v204_v4, %v542_v8 }
  0x26   :  { %v203_v36 = vsub.f32 %v123_v13, %v187_v32 }
  0x28   :  { %vm222_vm11 = vcmp.eq.f32.partialorder %v203_v36, %v542_v8 }
  0x29   :  { %v238_v47 = vsel %vm222_vm11, 1.0, %v505_v1  ;;  %vm403_vm11 = vcmp.eq.f32.partialorder %v175_v50, %v546_v14 }
  0x97   :  { %v63_v29 = vpop.f32.mrf.mxu0 }
  0x98   :  { %458 = vmatmul.msk.f32.vlgmr.msra.gmra.mxu1 %vm33_vm0, %v63_v29  ;;  %462 = vmatmul.msk.f32.vlgmr.msra.gmra.mxu2 %vm33_vm0, %v63_v29  ;;  %v193_v29 = vmul.f32 16.0, %v177_v19 }
  0x9a   :  { %v209_v39 = vsub.f32 %v129_v54, %v193_v29  ;;  %v109_v54 = vadd.s32 64, %v540_v7 }
  0x9c   :  { %vm228_vm12 = vcmp.eq.f32.partialorder %v209_v39, %v542_v8  ;;  %v125_v60 = vcvt.s32.f32 %v109_v54 }
  0x9d   :  { %v244_v13 = vsel %vm228_vm12, 1.0, %v505_v1  ;;  %vm402_vm12 = vcmp.eq.f32.partialorder %v174_v37, %v546_v14 }
  0x9e   :  { %v141_v12 = vadd.f32 0.5, %v125_v60 }
  0x9f   :  { %v66_v30 = vpop.f32.mrf.mxu0 }
  0xa0   :  { %459 = vmatmul.msk.f32.gmra.mxu1 %vm33_vm0, %v66_v30  ;;  %463 = vmatmul.msk.f32.gmra.mxu2 %vm33_vm0, %v66_v30  ;;  %v627_v30 = vmul.f32 0.0625, %v146_v20  ;;  %v678_v20 = vmul.f32 0.0625, %v141_v12 }
  0xa2   :  { %v178_v40 = vfloor.f32 %v627_v30  ;;  %v173_v31 = vfloor.f32 %v678_v20 }
  0xa4   :  { %v194_v55 = vmul.f32 16.0, %v178_v40  ;;  %v189_v33 = vmul.f32 16.0, %v173_v31 }
  0xa6   :  { %v210_v15 = vsub.f32 %v130_v11, %v194_v55  ;;  %v148_v11 = vadd.f32 0.5, %v132_v62  ;;  %v205_v41 = vsub.f32 %v125_v60, %v189_v33 }
  0xa8   :  { %vm229_vm1 = vcmp.eq.f32.partialorder %v210_v15, %v542_v8  ;;  %v164_v39 = vmul.f32 0.0625, %v148_v11  ;;  %vm224_vm2 = vcmp.eq.f32.partialorder %v205_v41, %v542_v8 }
  0xa9   :  { %v245_v49 = vsel %vm229_vm1, 1.0, %v505_v1  ;;  %v240_v54 = vsel %vm224_vm2, 1.0, %v505_v1  ;;  %vm398_vm1 = vcmp.eq.f32.partialorder %v170_v6, %v546_v14  ;;  %vm397_vm2 = vcmp.eq.f32.partialorder %v169_v52, %v546_v14 }
  0xaa   :  { %v180_v57 = vfloor.f32 %v164_v39 }
  0xac   :  { %vm408_vm7 = vcmp.eq.f32.partialorder %v180_v57, %v546_v14 }
 0x115   :  { %v94_v37 = vpop.f32.mrf.mxu1 }
 0x11b   :  { %v274_v46 = vpop.f32.mrf.mxu2 }
 0x11d   :  { %v97_v43 = vpop.f32.mrf.mxu1 }
 0x123   :  { %v277_v61 = vpop.f32.mrf.mxu2 }
 0x124   :  { %342 = vmatpush.msrb.mxu0 %v277_v61  ;;  %496 = vmatpush.msrb.mxu2 %v277_v61 }
 0x125   :  { %497 = vmatpush.msra.mxu3 %v277_v61 }
 0x126   :  { %343 = vmatpush.msrb.mxu0 %v274_v46  ;;  %498 = vmatpush.msrb.mxu2 %v274_v46 }
 0x127   :  { %499 = vmatpush.msra.mxu3 %v274_v46  ;;  %468 = vmatmul.msk.f32.vlgmr.msrb.gmra.mxu2 %vm33_vm0, %v236_v3  ;;  %v147_v46 = vadd.f32 0.5, %v131_v34  ;;  %v197_v3 = vsub.f32 %v556_v27, %v181_v56 }
 0x128   :  { %473 = vmatmul.msk.f32.vlgmr.msra.gmra.mxu3 %vm33_vm0, %v241_v2  ;;  %v104_v2 = vadd.s32 24, %v540_v7  ;;  %v182_v7 = vmul.f32 16.0, %v166_v9 }
 0x129   :  { %v664_v61 = vmul.f32 0.0625, %v147_v46  ;;  %vm216_vm13 = vcmp.eq.f32.partialorder %v197_v3, %v542_v8 }
 0x12a   :  { %v120_v18 = vcvt.s32.f32 %v104_v2  ;;  %v232_v27 = vsel %vm216_vm13, 1.0, %v505_v1  ;;  %v198_v29 = vsub.f32 %v548_v16, %v182_v7  ;;  %vm401_vm13 = vcmp.eq.f32.partialorder %v173_v31, %v546_v14 }
 0x12b   :  { %v179_v28 = vfloor.f32 %v664_v61  ;;  %464 = vmatmul.msk.f32.vlgmr.msrb.gmra.mxu0 %vm33_vm0, %v232_v27  ;;  %v196_v61 = vmul.f32 16.0, %v180_v57 }
 0x12c   :  { %v136_v25 = vadd.f32 0.5, %v120_v18  ;;  %vm217_vm15 = vcmp.eq.f32.partialorder %v198_v29, %v542_v8 }
 0x12d   :  { %v195_v16 = vmul.f32 16.0, %v179_v28  ;;  %vm407_vm8 = vcmp.eq.f32.partialorder %v179_v28, %v546_v14 }
 0x12e   :  { %v693_v36 = vmul.f32 0.0625, %v136_v25 }
 0x12f   :  { %469 = vmatmul.msk.f32.gmra.mxu2 %vm33_vm0, %v237_v23  ;;  %v135_v23 = vadd.f32 0.5, %v119_v17  ;;  %v211_v56 = vsub.f32 %v131_v34, %v195_v16  ;;  %v212_v34 = vsub.f32 %v132_v62, %v196_v61 }
 0x130   :  { %474 = vmatmul.msk.f32.gmra.mxu3 %vm33_vm0, %v242_v22  ;;  %v239_v22 = vsel %vm223_vm14, 1.0, %v505_v1  ;;  %vm400_vm14 = vcmp.eq.f32.partialorder %v172_v53, %v546_v14 }
 0x131   :  { %v687_v32 = vmul.f32 0.0625, %v135_v23  ;;  %vm230_vm4 = vcmp.eq.f32.partialorder %v211_v56, %v542_v8  ;;  %vm231_vm6 = vcmp.eq.f32.partialorder %v212_v34, %v542_v8 }
 0x132   :  { %v246_v24 = vsel %vm230_vm4, 1.0, %v505_v1  ;;  %v247_v4 = vsel %vm231_vm6, 1.0, %v505_v1  ;;  %vm393_vm6 = vcmp.eq.f32.partialorder %v165_v51, %v546_v14 }
 0x133   :  { %v167_v38 = vfloor.f32 %v687_v32 }
 0x135   :  { %v183_v46 = vmul.f32 16.0, %v167_v38  ;;  %vm395_vm4 = vcmp.eq.f32.partialorder %v167_v38, %v546_v14 }
 0x137   :  { %470 = vmatmul.msk.f32.gmra.mxu2 %vm33_vm0, %v238_v47  ;;  %v168_v47 = vfloor.f32 %v693_v36  ;;  %v199_v55 = vsub.f32 %v119_v17, %v183_v46 }
 0x138   :  { %475 = vmatmul.msk.f32.gmra.mxu3 %vm33_vm0, %v243_v45  ;;  %v233_v45 = vsel %vm217_vm15, 1.0, %v505_v1  ;;  %vm399_vm15 = vcmp.eq.f32.partialorder %v171_v26, %v546_v14 }
 0x139   :  { %465 = vmatmul.msk.f32.gmra.mxu0 %vm33_vm0, %v233_v45  ;;  %vm218_vm3 = vcmp.eq.f32.partialorder %v199_v55, %v542_v8  ;;  %v184_v60 = vmul.f32 16.0, %v168_v47 }
 0x13a   :  { %v234_v63 = vsel %vm218_vm3, 1.0, %v505_v1  ;;  %vm396_vm3 = vcmp.eq.f32.partialorder %v168_v47, %v546_v14 }
 0x13b   :  { %v200_v2 = vsub.f32 %v120_v18, %v184_v60 }
 0x13d   :  { %vm219_vm5 = vcmp.eq.f32.partialorder %v200_v2, %v542_v8 }
 0x13e   :  { %v235_v3 = vsel %vm219_vm5, 1.0, %v505_v1  ;;  %vm394_vm5 = vcmp.eq.f32.partialorder %v166_v9, %v546_v14 }
 0x13f   :  { %471 = vmatmul.msk.f32.gmra.mxu2 %vm33_vm0, %v239_v22 }
 0x140   :  { %476 = vmatmul.msk.f32.gmra.mxu3 %vm33_vm0, %v244_v13 }
 0x141   :  { %466 = vmatmul.msk.f32.gmra.mxu0 %vm33_vm0, %v234_v63 }
 0x147   :  { %472 = vmatmul.msk.f32.gmra.mxu2 %vm33_vm0, %v240_v54 }
 0x148   :  { %477 = vmatmul.msk.f32.gmra.mxu3 %vm33_vm0, %v245_v49 }
 0x149   :  { %467 = vmatmul.msk.f32.gmra.mxu0 %vm33_vm0, %v235_v3 }
 0x150   :  { %478 = vmatmul.msk.f32.gmra.mxu3 %vm33_vm0, %v246_v24 }
 0x158   :  { %479 = vmatmul.msk.f32.gmra.mxu3 %vm33_vm0, %v247_v4  ;;  %vm406_vm0 = vcmp.eq.f32.partialorder %v178_v40, %v546_v14 }
 0x1a8   :  { %v345_v23 = vpop.f32.mrf.mxu0 }
 0x1aa   :  { %v357_v62 = vpop.f32.mrf.mxu2 }
 0x1ab   :  { %v372_v12 = vpop.f32.mrf.mxu3 }
 0x1b2   :  { %v360_v18 = vpop.f32.mrf.mxu2 }
 0x1b3   :  { %v375_v13 = vpop.f32.mrf.mxu3 }
 0x1b6   :  { %v348_v25 = vpop.f32.mrf.mxu0 }
 0x1ba   :  { %v363_v27 = vpop.f32.mrf.mxu2 }
 0x1bb   :  { %v378_v15 = vpop.f32.mrf.mxu3 }
 0x1be   :  { %v351_v10 = vpop.f32.mrf.mxu0 }
 0x1c2   :  { %v366_v1 = vpop.f32.mrf.mxu2 }
 0x1c3   :  { %v381_v17 = vpop.f32.mrf.mxu3 }
 0x1c6   :  { %v354_v35 = vpop.f32.mrf.mxu0 }
 0x1ca   :  { %v369_v30 = vpop.f32.mrf.mxu2 }
 0x1cb   :  { %v384_v7 = vpop.f32.mrf.mxu3 }
 0x1d3   :  { %v387_v22 = vpop.f32.mrf.mxu3 }
 0x1db   :  { %v390_v8 = vpop.f32.mrf.mxu3 }
 0x1dc   :  { %480 = vmatpush.msk.msrb.mxu1 %vm408_vm7, %v390_v8 }
 0x1de   :  { %481 = vmatpush.msk.msrb.mxu1 %vm407_vm8, %v387_v22 }
 0x1e0   :  { %482 = vmatpush.msk.msrb.mxu1 %vm406_vm0, %v384_v7 }
 0x1e2   :  { %483 = vmatpush.msk.msrb.mxu1 %vm405_vm9, %v381_v17 }
 0x1e4   :  { %484 = vmatpush.msk.msrb.mxu1 %vm404_vm10, %v378_v15 }
 0x1e6   :  { %485 = vmatpush.msk.msrb.mxu1 %vm403_vm11, %v375_v13 }
 0x1e8   :  { %486 = vmatpush.msk.msrb.mxu1 %vm402_vm12, %v372_v12 }
 0x1ea   :  { %487 = vmatpush.msk.msrb.mxu1 %vm401_vm13, %v369_v30 }
 0x1ec   :  { %488 = vmatpush.msk.msrb.mxu1 %vm400_vm14, %v366_v1 }
 0x1ee   :  { %489 = vmatpush.msk.msrb.mxu1 %vm399_vm15, %v363_v27 }
 0x1f0   :  { %490 = vmatpush.msk.msrb.mxu1 %vm398_vm1, %v360_v18 }
 0x1f2   :  { %491 = vmatpush.msk.msrb.mxu1 %vm397_vm2, %v357_v62 }
 0x1f4   :  { %492 = vmatpush.msk.msrb.mxu1 %vm396_vm3, %v354_v35 }
 0x1f6   :  { %493 = vmatpush.msk.msrb.mxu1 %vm395_vm4, %v351_v10 }
 0x1f8   :  { %494 = vmatpush.msk.msrb.mxu1 %vm394_vm5, %v348_v25 }
 0x1fa   :  { %495 = vmatpush.msk.msrb.mxu1 %vm393_vm6, %v345_v23 }
 0x1fb   :  { %441 = vmatmul.f32.vlgmr.msrb.gmra.mxu1 %v94_v37 }
 0x203   :  { %444 = vmatmul.f32.gmra.mxu1 %v97_v43 }
 0x278   :  { %v442_v48 = vpop.f32.mrf.mxu1 }
 0x279   :  { %448 = vst [vmem:[%s776_s3] sm:$0xff] %v442_v48 }
 0x280   :  { %v445_v50 = vpop.f32.mrf.mxu1 }
 0x281   :  { %449 = vst [vmem:[%s776_s3 + $0x8] sm:$0xff] %v445_v50 }

// kernel: riemannian_batch_norm_forward.5
= control target key start
LH: loop header
LB: loop body
LE: loop exit
PB: predicated region body
PF: predicated region fallthrough
CT: control target
= control target key end

     0   :  { %vm47_vm0 = vcmask 130048   ;;  %s88_s0 = inlined_call_operand.vmem [shape: f32[16,128], index: 0, kind: input, shape index: {}]   ;;  %s89_s1 = inlined_call_operand.vmem [shape: f32[1,128], index: 1, kind: input, shape index: {}]   ;;  %s90_s2 = inlined_call_operand.vmem [shape: f32[16,16], index: 2, kind: output, shape index: {}]  }
   0x1   :  { %v12_v0 = vld [vmem:[%s88_s0 + $0x8] sm:$0xff]  ;;  %v13_v1 = vld [vmem:[%s89_s1] sm:$0x1] }
   0x2   :  { %36 = vmatpush.xpose.msra.mxu0 %v12_v0  ;;  %54 = vmatpush.xpose.msra.mxu1 %v12_v0  ;;  %v14_v2 = vmax.f32 %v13_v1, 1e-30  ;;  %v11_v3 = vld [vmem:[%s88_s0] sm:$0xff] }
   0x4   :  { %56 = vlog2.f32 %v14_v2 }
   0x6   :  { %37 = vmatpush.xpose.msra.mxu0 %v11_v3  ;;  %55 = vmatpush.xpose.msra.mxu1 %v11_v3 }
   0xa   :  { %v57_v4 = vpop.eup %56 }
   0xb   :  { %v16_v5 = vmul.f32 0.6931472, %v57_v4 }
   0xd   :  { %v18_v6 = vperm.slane %v16_v5, 0 }
   0xf   :  { %v20_v7 = vmul.f32 %v18_v6, %v11_v3  ;;  %v21_v8 = vmul.f32 %v18_v6, %v12_v0 }
  0x11   :  { %38 = vmatmul.f32.vlgmr.msra.gmra.mxu0 %v20_v7  ;;  %41 = vmatmul.f32.vlgmr.msra.gmra.mxu1 %v21_v8 }
  0x8e   :  { %v39_v9 = vpop.f32.mrf.mxu0  ;;  %v42_v10 = vpop.f32.mrf.mxu1 }
  0x8f   :  { %v45_v11 = vmul.f32 0.125, %v39_v9  ;;  %v46_v12 = vmul.f32 0.125, %v42_v10 }
  0x91   :  { %48 = vst.msk [vmem:[%s90_s2] sm:$0xff] %vm47_vm0, %v45_v11 }
  0x92   :  { %49 = vst.msk [vmem:[%s90_s2 + $0x8] sm:$0xff] %vm47_vm0, %v46_v12 }

// kernel: riemannian_batch_norm_forward.7
= control target key start
LH: loop header
LB: loop body
LE: loop exit
PB: predicated region body
PF: predicated region fallthrough
CT: control target
= control target key end

     0   :  { %v82_v0 = vlaneseq  ;;  %vm23_vm0 = vcmask 1040384   ;;  %v397_v18 = vmov 1.0   ;;  %vm99_vm3 = vcmask 130048   ;;  %s605_s3 = inlined_call_operand.vmem [shape: f32[1,128], index: 3, kind: input, shape index: {}]   ;;  %s606_s2 = inlined_call_operand.vmem [shape: f32[128,16], index: 2, kind: input, shape index: {}]   ;;  %s607_s0 = inlined_call_operand.<no memory space> [shape: f32[1], index: 0, kind: input, shape index: {}]   ;;  %s608_s1 = inlined_call_operand.vmem [shape: f32[16,128], index: 1, kind: input, shape index: {}]   ;;  %s609_s4 = inlined_call_operand.vmem [shape: f32[16,128], index: 4, kind: output, shape index: {}]  }
   0x1   :  { %v18_v1 = vld [vmem:[%s605_s3] sm:$0x1]  ;;  %v72_v19 = vld [vmem:[%s606_s2 + $0x30] sm:$0xff]  ;;  %v73_v22 = vld [vmem:[%s606_s2 + $0x38] sm:$0xff] }
   0x2   :  { %v19_v2 = vmax.f32 %v18_v1, 1e-30  ;;  %v83_v3 = vand.u32 127, %v82_v0  ;;  %v426_v5 = vshrl.u32 %v82_v0, 7  ;;  %v78_v20 = vld [vmem:[%s606_s2 + $0x60] sm:$0xff]  ;;  %v79_v23 = vld [vmem:[%s606_s2 + $0x68] sm:$0xff] }
   0x3   :  { %v66_v21 = vld [vmem:[%s606_s2] sm:$0xff]  ;;  %v67_v24 = vld [vmem:[%s606_s2 + $0x8] sm:$0xff]  ;;  %v80_v26 = vld [vmem:[%s606_s2 + $0x70] sm:$0xff] }
   0x4   :  { %389 = vlog2.f32 %v19_v2  ;;  %v84_v4 = vcvt.s32.f32 %v83_v3  ;;  %v429_v8 = vadd.s32 8, %v426_v5  ;;  %v93_v14 = vcvt.s32.f32 %v426_v5  ;;  %v74_v25 = vld [vmem:[%s606_s2 + $0x40] sm:$0xff]  ;;  %v68_v27 = vld [vmem:[%s606_s2 + $0x10] sm:$0xff]  ;;  %v75_v28 = vld [vmem:[%s606_s2 + $0x48] sm:$0xff] }
   0x5   :  { %v81_v29 = vld [vmem:[%s606_s2 + $0x78] sm:$0xff]  ;;  %v76_v31 = vld [vmem:[%s606_s2 + $0x50] sm:$0xff]  ;;  %v70_v32 = vld [vmem:[%s606_s2 + $0x20] sm:$0xff]  ;;  %v226_v49 = vadd.s32 120, %v426_v5  ;;  %v225_v51 = vadd.s32 112, %v426_v5  ;;  %v224_v54 = vadd.s32 104, %v426_v5 }
   0x6   :  { %v85_v6 = vadd.f32 0.5, %v84_v4  ;;  %v94_v13 = vcvt.s32.f32 %v429_v8  ;;  %v69_v30 = vld [vmem:[%s606_s2 + $0x18] sm:$0xff]  ;;  %v71_v34 = vld [vmem:[%s606_s2 + $0x28] sm:$0xff]  ;;  %v223_v58 = vadd.s32 96, %v426_v5 }
   0x7   :  { %v77_v33 = vld [vmem:[%s606_s2 + $0x58] sm:$0xff]  ;;  %v240_v53 = vcvt.s32.f32 %v226_v49  ;;  %v239_v57 = vcvt.s32.f32 %v225_v51  ;;  %v238_v61 = vcvt.s32.f32 %v224_v54 }
   0x8   :  { %v86_v7 = vmul.f32 0.0625, %v85_v6  ;;  %v237_v63 = vcvt.s32.f32 %v223_v58 }
   0x9   :  { %v256_v60 = vadd.f32 0.5, %v240_v53  ;;  %v255_v62 = vadd.f32 0.5, %v239_v57  ;;  %v254_v2 = vadd.f32 0.5, %v238_v61 }
   0xa   :  { %v390_v9 = vpop.eup %389  ;;  %v431_v10 = vfloor.f32 %v86_v7 }
   0xb   :  { %v433_v11 = vmul.f32 0.6931472, %v390_v9  ;;  %v272_v1 = vmul.f32 0.0625, %v256_v60  ;;  %v271_v7 = vmul.f32 0.0625, %v255_v62  ;;  %v253_v9 = vadd.f32 0.5, %v237_v63 }
   0xc   :  { %v88_v12 = vmul.f32 16.0, %v431_v10  ;;  %v42_v60 = vstv %s607_s0  ;;  %v214_v62 = vadd.s32 24, %v426_v5 }
   0xd   :  { %v22_v15 = vmul.f32 %v433_v11, %v433_v11 }
   0xe   :  { %v89_v16 = vsub.f32 %v84_v4, %v88_v12  ;;  %v222_v12 = vadd.s32 88, %v426_v5 }
   0xf   :  { %v24_v17 = vsel %vm23_vm0, %v22_v15, 0.0  ;;  %v288_v15 = vfloor.f32 %v272_v1 }
  0x10   :  { %25 = vadd.xlane.f32.xlu0 %v24_v17  ;;  %vm96_vm1 = vcmp.eq.f32.partialorder %v89_v16, %v94_v13  ;;  %vm95_vm2 = vcmp.eq.f32.partialorder %v89_v16, %v93_v14  ;;  %v270_v16 = vmul.f32 0.0625, %v254_v2  ;;  %v221_v17 = vadd.s32 80, %v426_v5 }
  0x11   :  { %384 = vmatpush.msk.msra.mxu2 %vm96_vm1, %v397_v18  ;;  %385 = vmatpush.msk.msra.mxu3 %vm96_vm1, %v397_v18  ;;  %vm304_vm6 = vcmp.eq.f32.partialorder %v288_v15, %v431_v10 }
  0x12   :  { %350 = vmatpush.msk.msra.mxu0 %vm96_vm1, %v397_v18 }
  0x13   :  { %386 = vmatpush.msk.msra.mxu2 %vm95_vm2, %v397_v18  ;;  %387 = vmatpush.msk.msra.mxu3 %vm95_vm2, %v397_v18 }
  0x14   :  { %358 = vmatmul.msk.f32.vlgmr.msra.gmra.mxu2 %vm99_vm3, %v72_v19  ;;  %364 = vmatmul.msk.f32.vlgmr.msra.gmra.mxu3 %vm99_vm3, %v78_v20  ;;  %v287_v19 = vfloor.f32 %v271_v7 }
  0x15   :  { %351 = vmatpush.msk.msra.mxu0 %vm95_vm2, %v397_v18 }
  0x16   :  { %352 = vmatmul.msk.f32.vlgmr.msra.gmra.mxu0 %vm99_vm3, %v66_v21  ;;  %v269_v21 = vmul.f32 0.0625, %v253_v9  ;;  %vm303_vm7 = vcmp.eq.f32.partialorder %v287_v19, %v431_v10 }
  0x1c   :  { %359 = vmatmul.msk.f32.gmra.mxu2 %vm99_vm3, %v73_v22  ;;  %365 = vmatmul.msk.f32.gmra.mxu3 %vm99_vm3, %v79_v23  ;;  %v236_v22 = vcvt.s32.f32 %v222_v12  ;;  %v220_v23 = vadd.s32 72, %v426_v5 }
  0x1e   :  { %353 = vmatmul.msk.f32.gmra.mxu0 %vm99_vm3, %v67_v24  ;;  %v286_v24 = vfloor.f32 %v270_v16  ;;  %v228_v16 = vcvt.s32.f32 %v214_v62 }
  0x20   :  { %vm302_vm8 = vcmp.eq.f32.partialorder %v286_v24, %v431_v10 }
  0x24   :  { %360 = vmatmul.msk.f32.gmra.mxu2 %vm99_vm3, %v74_v25  ;;  %366 = vmatmul.msk.f32.gmra.mxu3 %vm99_vm3, %v80_v26  ;;  %v235_v25 = vcvt.s32.f32 %v221_v17 }
  0x26   :  { %354 = vmatmul.msk.f32.gmra.mxu0 %vm99_vm3, %v68_v27 }
  0x2c   :  { %361 = vmatmul.msk.f32.gmra.mxu2 %vm99_vm3, %v75_v28  ;;  %367 = vmatmul.msk.f32.gmra.mxu3 %vm99_vm3, %v81_v29  ;;  %v285_v29 = vfloor.f32 %v269_v21 }
  0x2e   :  { %355 = vmatmul.msk.f32.gmra.mxu0 %vm99_vm3, %v69_v30  ;;  %v219_v30 = vadd.s32 64, %v426_v5  ;;  %vm301_vm10 = vcmp.eq.f32.partialorder %v285_v29, %v431_v10 }
  0x34   :  { %362 = vmatmul.msk.f32.gmra.mxu2 %vm99_vm3, %v76_v31  ;;  %v252_v31 = vadd.f32 0.5, %v236_v22 }
  0x36   :  { %356 = vmatmul.msk.f32.gmra.mxu0 %vm99_vm3, %v70_v32  ;;  %v234_v32 = vcvt.s32.f32 %v220_v23 }
  0x3c   :  { %363 = vmatmul.msk.f32.gmra.mxu2 %vm99_vm3, %v77_v33  ;;  %v218_v33 = vadd.s32 56, %v426_v5 }
  0x3e   :  { %357 = vmatmul.msk.f32.gmra.mxu0 %vm99_vm3, %v71_v34  ;;  %v251_v34 = vadd.f32 0.5, %v235_v25 }
  0x40   :  { %v267_v49 = vmul.f32 0.0625, %v251_v34 }
  0x42   :  { %v283_v1 = vfloor.f32 %v267_v49 }
  0x44   :  { %vm299_vm15 = vcmp.eq.f32.partialorder %v283_v1, %v431_v10 }
  0x83   :  { %v26_v35 = vpop.xlane.xlu0 %25 }
  0x84   :  { %v27_v36 = vmul.f32 0.125, %v26_v35 }
  0x86   :  { %391 = vrsqrt.f32 %v27_v36  ;;  %vm36_vm4 = vcmp.eq.f32.partialorder %v27_v36, inf  ;;  %v39_v43 = vand.u32 2147483648, %v27_v36  ;;  %vm38_vm5 = vcmp.eq.f32.partialorder %v27_v36, 0.0 }
  0x8c   :  { %v392_v37 = vpop.eup %391 }
  0x8d   :  { %v30_v38 = vmul.f32 %v392_v37, %v27_v36 }
  0x8f   :  { %v31_v39 = vmul.f32 %v392_v37, %v30_v38 }
  0x91   :  { %v32_v40 = vmul.f32 0.5, %v31_v39  ;;  %v268_v39 = vmul.f32 0.0625, %v252_v31 }
  0x93   :  { %v33_v41 = vsub.f32 1.5, %v32_v40  ;;  %v508_v44 = vpop.f32.mrf.mxu0  ;;  %v250_v40 = vadd.f32 0.5, %v234_v32  ;;  %v284_v57 = vfloor.f32 %v268_v39 }
  0x95   :  { %v34_v42 = vmul.f32 %v392_v37, %v33_v41  ;;  %v217_v37 = vadd.s32 48, %v426_v5  ;;  %v266_v58 = vmul.f32 0.0625, %v250_v40  ;;  %vm300_vm14 = vcmp.eq.f32.partialorder %v284_v57, %v431_v10 }
  0x97   :  { %v35_v45 = vmul.f32 %v34_v42, %v27_v36  ;;  %v510_v46 = vpop.f32.mrf.mxu2  ;;  %v512_v47 = vpop.f32.mrf.mxu3  ;;  %v231_v54 = vcvt.s32.f32 %v217_v37  ;;  %v282_v9 = vfloor.f32 %v266_v58  ;;  %v241_v37 = vadd.f32 0.5, %v93_v14 }
  0x99   :  { %v37_v48 = vsel %vm36_vm4, %v27_v36, %v35_v45  ;;  %v233_v36 = vcvt.s32.f32 %v219_v30  ;;  %v216_v45 = vadd.s32 40, %v426_v5  ;;  %v247_v2 = vadd.f32 0.5, %v231_v54 }
  0x9a   :  { %v40_v50 = vsel %vm38_vm5, %v39_v43, %v37_v48  ;;  %v232_v43 = vcvt.s32.f32 %v218_v33  ;;  %vm298_vm0 = vcmp.eq.f32.partialorder %v282_v9, %v431_v10 }
  0x9b   :  { %v516_v52 = vadd.f32 1e-05, %v40_v50  ;;  %v523_v59 = vpop.f32.mrf.mxu0  ;;  %v249_v53 = vadd.f32 0.5, %v233_v36  ;;  %v263_v21 = vmul.f32 0.0625, %v247_v2 }
  0x9c   :  { %v248_v61 = vadd.f32 0.5, %v232_v43 }
  0x9d   :  { %393 = vrcp.f32 %v516_v52  ;;  %v54_v38 = vand.u32 2147483648, %v516_v52  ;;  %vm48_vm11 = vweird.f32 %v516_v52  ;;  %v52_v41 = vand.u32 2147483647, %v516_v52 }
  0x9e   :  { %v264_v12 = vmul.f32 0.0625, %v248_v61  ;;  %v279_v29 = vfloor.f32 %v263_v21 }
  0x9f   :  { %v520_v55 = vpop.f32.mrf.mxu2  ;;  %v204_v56 = vpop.f32.mrf.mxu3  ;;  %vm53_vm13 = vcmp.eq.f32.partialorder %v52_v41, 8.507059e+37  ;;  %v62_v41 = vld [vmem:[%s608_s1 + $0x8] sm:$0xff] }
  0xa0   :  { %v280_v25 = vfloor.f32 %v264_v12  ;;  %vm295_vm3 = vcmp.eq.f32.partialorder %v279_v29, %v431_v10 }
  0xa2   :  { %vm296_vm2 = vcmp.eq.f32.partialorder %v280_v25, %v431_v10 }
  0xa3   :  { %v525_v0 = vpop.eup %393  ;;  %v533_v20 = vpop.f32.mrf.mxu0 }
  0xa4   :  { %v44_v3 = vmul.f32 %v525_v0, %v516_v52  ;;  %vm49_vm9 = vweird.f32 %v525_v0  ;;  %v215_v52 = vadd.s32 32, %v426_v5 }
  0xa5   :  { %vm554_vm12 = vmor %vm48_vm11, %vm49_vm9 }
  0xa6   :  { %v45_v18 = vsub.f32 1.0, %v44_v3  ;;  %v229_v3 = vcvt.s32.f32 %v215_v52 }
  0xa7   :  { %v529_v4 = vpop.f32.mrf.mxu2  ;;  %v207_v6 = vpop.f32.mrf.mxu3 }
  0xa8   :  { %v46_v26 = vmul.f32 %v525_v0, %v45_v18  ;;  %v245_v22 = vadd.f32 0.5, %v229_v3 }
  0xaa   :  { %v47_v35 = vadd.f32 %v525_v0, %v46_v26  ;;  %v261_v30 = vmul.f32 0.0625, %v245_v22 }
  0xab   :  { %v551_v42 = vpop.f32.mrf.mxu0 }
  0xac   :  { %v51_v50 = vsel %vm554_vm12, %v525_v0, %v47_v35  ;;  %v265_v0 = vmul.f32 0.0625, %v249_v53  ;;  %v277_v35 = vfloor.f32 %v261_v30 }
  0xae   :  { %v281_v19 = vfloor.f32 %v265_v0  ;;  %vm293_vm5 = vcmp.eq.f32.partialorder %v277_v35, %v431_v10 }
  0xaf   :  { %v538_v27 = vpop.f32.mrf.mxu2  ;;  %v210_v28 = vpop.f32.mrf.mxu3 }
  0xb0   :  { %368 = vmatpush.msk.msra.mxu1 %vm304_vm6, %v210_v28  ;;  %v244_v28 = vadd.f32 0.5, %v228_v16  ;;  %vm297_vm1 = vcmp.eq.f32.partialorder %v281_v19, %v431_v10 }
  0xb2   :  { %369 = vmatpush.msk.msra.mxu1 %vm303_vm7, %v207_v6  ;;  %v213_v6 = vadd.s32 16, %v426_v5  ;;  %v260_v34 = vmul.f32 0.0625, %v244_v28 }
  0xb3   :  { %v177_v18 = vpop.f32.mrf.mxu0 }
  0xb4   :  { %370 = vmatpush.msk.msra.mxu1 %vm302_vm8, %v204_v56  ;;  %v55_v56 = vor.u32 1.1754944e-38, %v54_v38  ;;  %v227_v23 = vcvt.s32.f32 %v213_v6  ;;  %v276_v38 = vfloor.f32 %v260_v34 }
  0xb6   :  { %371 = vmatpush.msk.msra.mxu1 %vm301_vm10, %v512_v47  ;;  %v230_v47 = vcvt.s32.f32 %v216_v45  ;;  %v56_v63 = vsel %vm53_vm13, %v55_v56, %v51_v50  ;;  %v243_v31 = vadd.f32 0.5, %v227_v23  ;;  %vm292_vm6 = vcmp.eq.f32.partialorder %v276_v38, %v431_v10 }
  0xb7   :  { %v195_v51 = vpop.f32.mrf.mxu2  ;;  %v57_v7 = vmul.f32 %v56_v63, %v42_v60 }
  0xb8   :  { %v246_v15 = vadd.f32 0.5, %v230_v47  ;;  %v259_v36 = vmul.f32 0.0625, %v243_v31 }
  0xb9   :  { %v58_v24 = vmul.f32 %v57_v7, %v433_v11  ;;  %v242_v11 = vadd.f32 0.5, %v94_v13  ;;  %v257_v13 = vmul.f32 0.0625, %v241_v37 }
  0xba   :  { %v262_v26 = vmul.f32 0.0625, %v246_v15  ;;  %v275_v8 = vfloor.f32 %v259_v36 }
  0xbb   :  { %v59_v32 = vmul.f32 1.442695, %v58_v24  ;;  %v258_v39 = vmul.f32 0.0625, %v242_v11  ;;  %v273_v14 = vfloor.f32 %v257_v13 }
  0xbc   :  { %v278_v33 = vfloor.f32 %v262_v26  ;;  %vm291_vm7 = vcmp.eq.f32.partialorder %v275_v8, %v431_v10 }
  0xbd   :  { %395 = vpow2.f32 %v59_v32  ;;  %vm289_vm9 = vcmp.eq.f32.partialorder %v273_v14, %v431_v10 }
  0xbe   :  { %vm294_vm4 = vcmp.eq.f32.partialorder %v278_v33, %v431_v10 }
  0xbf   :  { %v198_v17 = vpop.f32.mrf.mxu2 }
  0xc0   :  { %372 = vmatpush.msk.msra.mxu1 %vm300_vm14, %v198_v17 }
  0xc2   :  { %373 = vmatpush.msk.msra.mxu1 %vm299_vm15, %v195_v51 }
  0xc3   :  { %v396_v5 = vpop.eup %395 }
  0xc4   :  { %374 = vmatpush.msk.msra.mxu1 %vm298_vm0, %v538_v27  ;;  %v180_v27 = vpop.f32.mrf.mxu0 }
  0xc6   :  { %375 = vmatpush.msk.msra.mxu1 %vm297_vm1, %v529_v4  ;;  %v274_v4 = vfloor.f32 %v258_v39 }
  0xc8   :  { %376 = vmatpush.msk.msra.mxu1 %vm296_vm2, %v520_v55  ;;  %vm290_vm8 = vcmp.eq.f32.partialorder %v274_v4, %v431_v10  ;;  %v63_v55 = vperm.slane %v396_v5, 0 }
  0xca   :  { %377 = vmatpush.msk.msra.mxu1 %vm295_vm3, %v510_v46  ;;  %v61_v46 = vld [vmem:[%s608_s1] sm:$0xff] }
  0xcb   :  { %v64_v40 = vmul.f32 %v63_v55, %v61_v46 }
  0xcc   :  { %378 = vmatpush.msk.msra.mxu1 %vm294_vm4, %v180_v27 }
  0xce   :  { %379 = vmatpush.msk.msra.mxu1 %vm293_vm5, %v177_v18 }
  0xd0   :  { %380 = vmatpush.msk.msra.mxu1 %vm292_vm6, %v551_v42  ;;  %v65_v42 = vmul.f32 %v63_v55, %v62_v41 }
  0xd2   :  { %381 = vmatpush.msk.msra.mxu1 %vm291_vm7, %v533_v20 }
  0xd4   :  { %382 = vmatpush.msk.msra.mxu1 %vm290_vm8, %v523_v59 }
  0xd6   :  { %383 = vmatpush.msk.msra.mxu1 %vm289_vm9, %v508_v44 }
  0xd7   :  { %337 = vmatmul.f32.vlgmr.msra.gmra.mxu1 %v64_v40 }
  0xdf   :  { %340 = vmatmul.f32.gmra.mxu1 %v65_v42 }
 0x154   :  { %v338_v43 = vpop.f32.mrf.mxu1 }
 0x155   :  { %344 = vst [vmem:[%s609_s4] sm:$0xff] %v338_v43 }
 0x15c   :  { %v341_v20 = vpop.f32.mrf.mxu1 }
 0x15d   :  { %345 = vst [vmem:[%s609_s4 + $0x8] sm:$0xff] %v341_v20 }

</bundles_post_ra>
